<compile_context>
chip_gen: v7x
topology: tpu7x:2x2x1
jax: 0.10.0
libtpu: 0.0.40
codegen_flags: <defaults>
</compile_context>

<pallas_src>
import functools

import numpy as np

import jax
import jax.numpy as jnp
from jax import lax
from jax.experimental import pallas as pl
from jax.experimental.pallas import tpu as pltpu


# ------------------------------------------------------------------ kernel

def _fused_kernel(x2_ref, wqkv_ref, wfc_ref, w1_ref, b1_ref, w2_ref, b2_ref,
                  ln1_ref, ln2_ref, y2_ref, attn_ref, o_sc, *, n_head, eps):
    x2 = x2_ref[0]                         # [T, 2F] f32  ([xr | xi])
    T, F2 = x2.shape
    F = F2 // 2
    dk = F // n_head
    tdk = 2 * dk
    # A @ B^T without materializing B^T (contract last dims of both operands).
    dimnums = (((1,), (1,)), ((), ()))

    # ---- q/k/ks/v projections: ONE bf16 matmul [T,2F] @ [2F,8F], f32 acc ----
    x2_bf = x2.astype(jnp.bfloat16)
    qkv = jnp.dot(x2_bf, wqkv_ref[...],
                  preferred_element_type=jnp.float32).astype(jnp.bfloat16)
    # Column layout (per head h, width 2*dk each, inv_temp already folded in):
    #   [0*F2 ...] q  = [qr_h | qi_h]
    #   [1*F2 ...] k  = [kr_h | ki_h]
    #   [2*F2 ...] ks = [-ki_h | kr_h]
    #   [3*F2 ...] v  = [vr_h | vi_h]

    # ---- per-head complex attention (H is small; statically unrolled) ------
    # NOTE: production F should be padded so tdk offsets are 128-aligned.
    for h in range(n_head):
        lo, hi = h * tdk, (h + 1) * tdk
        q_h = qkv[:, 0 * F2 + lo:0 * F2 + hi]
        k_h = qkv[:, 1 * F2 + lo:1 * F2 + hi]
        ks_h = qkv[:, 2 * F2 + lo:2 * F2 + hi]
        v_h = qkv[:, 3 * F2 + lo:3 * F2 + hi]

        # (q/temp) @ conj(k)^T : two matmuls, contraction depth 2*dk.
        sr = lax.dot_general(q_h, k_h, dimnums,
                             preferred_element_type=jnp.float32)
        si = lax.dot_general(q_h, ks_h, dimnums,
                             preferred_element_type=jnp.float32)
        scores = jnp.sqrt(sr * sr + si * si)          # |.|, f32

        m = jnp.max(scores, axis=-1, keepdims=True)
        e = jnp.exp(scores - m)
        p = e * pl.reciprocal(jnp.sum(e, axis=-1, keepdims=True), approx=True)
        attn_ref[0, h] = p

        # output_h = [attn @ vr_h | attn @ vi_h] in one matmul.
        o_h = jnp.dot(p.astype(jnp.bfloat16), v_h,
                      preferred_element_type=jnp.float32)
        o_sc[:, lo:hi] = o_h.astype(jnp.bfloat16)

    def ln_pair(z12, g, b):
        # Independent LayerNorm over F features for the real and imag halves,
        # affine applied on the lane-dense 2F slab.
        def norm(v):
            mu = jnp.mean(v, axis=-1, keepdims=True)
            vc = v - mu
            var = jnp.mean(vc * vc, axis=-1, keepdims=True)
            return vc * lax.rsqrt(var + eps)
        return jnp.concatenate([norm(z12[:, :F]), norm(z12[:, F:])],
                               axis=-1) * g + b

    # ---- fc (no bias; rows pre-permuted to head-interleaved layout)
    #      + residual + ComplexLayerNorm 1 ------------------------------------
    f2 = jnp.dot(o_sc[...], wfc_ref[...], preferred_element_type=jnp.float32)
    ln1 = ln1_ref[...]                     # row 0: [gr|gi], row 1: [br|bi]
    h12 = ln_pair(f2 + x2, ln1[0:1, :], ln1[1:2, :])

    # ---- FFN: w_2(w_1(h)) (biases, NO activation) + residual + LN 2 --------
    a2 = jnp.dot(h12.astype(jnp.bfloat16), w1_ref[...],
                 preferred_element_type=jnp.float32) + b1_ref[...]
    z2 = jnp.dot(a2.astype(jnp.bfloat16), w2_ref[...],
                 preferred_element_type=jnp.float32) + b2_ref[...]
    ln2 = ln2_ref[...]
    y2_ref[0] = ln_pair(z2 + h12, ln2[0:1, :], ln2[1:2, :])


# --------------------------------------------------------------- packing

def _cblock(wr, wi):
    """Pack complex [K,N] weight into real [2K,2N] block [[wr,wi],[-wi,wr]]."""
    top = jnp.concatenate([wr, wi], axis=1)
    bot = jnp.concatenate([-wi, wr], axis=1)
    return jnp.concatenate([top, bot], axis=0)


def _head_interleave_idx(F, dk):
    """Columns of a [.., 2F]=[re(F)|im(F)] block -> [re_h0|im_h0|re_h1|...]."""
    idx = []
    for h in range(F // dk):
        idx += list(range(h * dk, (h + 1) * dk))
        idx += list(range(F + h * dk, F + (h + 1) * dk))
    return np.asarray(idx)


def _head_swap_idx(F, dk):
    """Columns of a [.., 2F]=[re(F)|im(F)] block -> [im_h0|re_h0|im_h1|...]."""
    idx = []
    for h in range(F // dk):
        idx += list(range(F + h * dk, F + (h + 1) * dk))
        idx += list(range(h * dk, (h + 1) * dk))
    return np.asarray(idx)


def pack_params(params):
    """One-time weight packing (bf16 MXU operands, head-interleaved layout)."""
    H = params["n_head"]
    F = params["wq_r"].shape[0]
    dk = F // H
    inv_temp = 1.0 / float(dk) ** 0.5

    idx = _head_interleave_idx(F, dk)
    swap_idx = _head_swap_idx(F, dk)
    # Per head: negate the (leading) imag columns of the swapped k block.
    sign = jnp.asarray(np.tile(np.concatenate([-np.ones(dk), np.ones(dk)]), H),
                       jnp.float32)

    q_blk = _cblock(params["wq_r"] * inv_temp, params["wq_i"] * inv_temp)[:, idx]
    k_std = _cblock(params["wk_r"], params["wk_i"])
    k_blk = k_std[:, idx]                       # [kr_h | ki_h]
    ks_blk = k_std[:, swap_idx] * sign[None, :]  # [-ki_h | kr_h]
    v_blk = _cblock(params["wv_r"], params["wv_i"])[:, idx]
    w_qkv = jnp.concatenate([q_blk, k_blk, ks_blk, v_blk], axis=1)  # [2F, 8F]

    w_fc = _cblock(params["wfc_r"], params["wfc_i"])[idx, :]  # rows permuted
    w_1 = _cblock(params["w1_r"], params["w1_i"])
    w_2 = _cblock(params["w2_r"], params["w2_i"])

    def ln_pack(gr, gi, br, bi):
        return jnp.concatenate(
            [jnp.concatenate([gr, gi], axis=1),
             jnp.concatenate([br, bi], axis=1)], axis=0)   # [2, 2F]

    return {
        "n_head": H,
        "w_qkv": w_qkv.astype(jnp.bfloat16),
        "w_fc": w_fc.astype(jnp.bfloat16),
        "w_1": w_1.astype(jnp.bfloat16),
        "w_2": w_2.astype(jnp.bfloat16),
        "b_1": jnp.concatenate([params["b1_r"], params["b1_i"]], axis=1),
        "b_2": jnp.concatenate([params["b2_r"], params["b2_i"]], axis=1),
        "ln1": ln_pack(params["ln1_gr"], params["ln1_gi"],
                       params["ln1_br"], params["ln1_bi"]),
        "ln2": ln_pack(params["ln2_gr"], params["ln2_gi"],
                       params["ln2_br"], params["ln2_bi"]),
    }


# --------------------------------------------------------------- wrapper

def _vmem_limit_bytes():
    try:
        kind = jax.devices()[0].device_kind.lower()
    except Exception:
        kind = ""
    if "v7" in kind or "7x" in kind:
        return 48 * 1024 * 1024          # v7x: 64 MiB physical, keep headroom
    if "v4" in kind or "v5" in kind or "v6" in kind:
        return 100 * 1024 * 1024         # 128 MiB physical
    return None                          # unknown: leave compiler default


def complex_self_attention(packed, xr, xi):
    B, T, F = xr.shape
    H = packed["n_head"]
    F2 = 2 * F
    d_hid2 = packed["w_1"].shape[1]

    x2 = jnp.concatenate([xr, xi], axis=-1)     # [B, T, 2F], lane-dense slab

    kernel = functools.partial(_fused_kernel, n_head=H, eps=1e-6)

    def const_spec(shape):
        n = len(shape)
        return pl.BlockSpec(shape, lambda b, n=n: (0,) * n)

    seq_spec = pl.BlockSpec((1, T, F2), lambda b: (b, 0, 0))

    y2, attn = pl.pallas_call(
        kernel,
        grid=(B,),
        in_specs=[
            seq_spec,                        # [xr | xi] slab
            const_spec((F2, 4 * F2)),        # packed q/k/ks/v (bf16)
            const_spec((F2, F2)),            # packed fc (bf16, rows permuted)
            const_spec((F2, d_hid2)),        # packed w1 (bf16)
            const_spec((1, d_hid2)),         # packed b1 (f32)
            const_spec((d_hid2, F2)),        # packed w2 (bf16)
            const_spec((1, F2)),             # packed b2 (f32)
            const_spec((2, F2)),             # LN1 params: [g | b] rows
            const_spec((2, F2)),             # LN2 params
        ],
        out_specs=(seq_spec,
                   pl.BlockSpec((1, H, T, T), lambda b: (b, 0, 0, 0))),
        out_shape=(jax.ShapeDtypeStruct((B, T, F2), jnp.float32),
                   jax.ShapeDtypeStruct((B, H, T, T), jnp.float32)),
        scratch_shapes=[pltpu.VMEM((T, F2), jnp.bfloat16)],   # attn-out slab
        compiler_params=pltpu.CompilerParams(
            dimension_semantics=("parallel",),
            vmem_limit_bytes=_vmem_limit_bytes()),
    )(x2, packed["w_qkv"], packed["w_fc"], packed["w_1"], packed["b_1"],
      packed["w_2"], packed["b_2"], packed["ln1"], packed["ln2"])

    yr, yi = y2[..., :F], y2[..., F:]
    enc_output = (yr + 1j * yi).astype(jnp.complex64)
    return enc_output, attn


# ----------------------------------------------------------------- params

def init_params(key, f_in, f_out, n_head):
    d_hid = f_out
    ks = jax.random.split(key, 12)

    def w(k, fan_in, fan_out):
        return (jax.random.normal(k, (fan_in, fan_out), jnp.float32)
                / jnp.sqrt(jnp.float32(fan_in)))

    return {
        "n_head": n_head,
        "wq_r": w(ks[0], f_in, f_in), "wq_i": w(ks[1], f_in, f_in),
        "wk_r": w(ks[2], f_in, f_in), "wk_i": w(ks[3], f_in, f_in),
        "wv_r": w(ks[4], f_in, f_in), "wv_i": w(ks[5], f_in, f_in),
        "wfc_r": w(ks[6], f_in, f_in), "wfc_i": w(ks[7], f_in, f_in),
        "w1_r": w(ks[8], f_in, d_hid), "w1_i": w(ks[9], f_in, d_hid),
        "b1_r": jnp.zeros((1, d_hid), jnp.float32),
        "b1_i": jnp.zeros((1, d_hid), jnp.float32),
        "w2_r": w(ks[10], d_hid, f_in), "w2_i": w(ks[11], d_hid, f_in),
        "b2_r": jnp.zeros((1, f_in), jnp.float32),
        "b2_i": jnp.zeros((1, f_in), jnp.float32),
        "ln1_gr": jnp.ones((1, f_in), jnp.float32),
        "ln1_gi": jnp.ones((1, f_in), jnp.float32),
        "ln1_br": jnp.zeros((1, f_in), jnp.float32),
        "ln1_bi": jnp.zeros((1, f_in), jnp.float32),
        "ln2_gr": jnp.ones((1, f_in), jnp.float32),
        "ln2_gi": jnp.ones((1, f_in), jnp.float32),
        "ln2_br": jnp.zeros((1, f_in), jnp.float32),
        "ln2_bi": jnp.zeros((1, f_in), jnp.float32),
    }


# --------------------------------------------------------------------- main

if __name__ == "__main__":
    B, T, F_IN, F_OUT, N_HEAD = 2, 8, 32, 64, 4

    key = jax.random.PRNGKey(0)
    k_param, k_xr, k_xi = jax.random.split(key, 3)

    params = init_params(k_param, F_IN, F_OUT, N_HEAD)
    packed = pack_params(params)          # one-time packing (not per call)

    xr = jax.random.normal(k_xr, (B, T, F_IN), jnp.float32)
    xi = jax.random.normal(k_xi, (B, T, F_IN), jnp.float32)

    enc_output, enc_slf_attn = complex_self_attention(packed, xr, xi)
    jax.block_until_ready((enc_output, enc_slf_attn))

    assert enc_output.shape == (B, T, F_IN) and enc_output.dtype == jnp.complex64
    assert enc_slf_attn.shape == (B, N_HEAD, T, T)
    assert bool(jnp.all(jnp.isfinite(enc_output.real)))
    print("KERNEL_OK")
</pallas_src>

<mosaic_0001>
module attributes {stable_mosaic.version = 11 : i64} {
  func.func @_fused_kernel(%arg0: i32, %arg1: memref<1x8x64xf32, #tpu.memory_space<vmem>>, %arg2: memref<64x256xbf16, #tpu.memory_space<vmem>>, %arg3: memref<64x64xbf16, #tpu.memory_space<vmem>>, %arg4: memref<64x128xbf16, #tpu.memory_space<vmem>>, %arg5: memref<1x128xf32, #tpu.memory_space<vmem>>, %arg6: memref<128x64xbf16, #tpu.memory_space<vmem>>, %arg7: memref<1x64xf32, #tpu.memory_space<vmem>>, %arg8: memref<2x64xf32, #tpu.memory_space<vmem>>, %arg9: memref<2x64xf32, #tpu.memory_space<vmem>>, %arg10: memref<1x8x64xf32, #tpu.memory_space<vmem>>, %arg11: memref<1x4x8x8xf32, #tpu.memory_space<vmem>>, %arg12: memref<8x64xbf16, #tpu.memory_space<vmem>>) attributes {dimension_semantics = [#tpu.dimension_semantics<parallel>], iteration_bounds = array<i64: 2>, scalar_prefetch = 0 : i64, scratch_operands = 1 : i64, tpu.core_type = #tpu.core_type<tc>, window_params = [{transform_indices = @transform_0, window_bounds = array<i64: 1, 8, 64>}, {pipeline_mode = #tpu.pipeline_mode<synchronous>, transform_indices = @transform_1, window_bounds = array<i64: 64, 256>}, {pipeline_mode = #tpu.pipeline_mode<synchronous>, transform_indices = @transform_2, window_bounds = array<i64: 64, 64>}, {pipeline_mode = #tpu.pipeline_mode<synchronous>, transform_indices = @transform_3, window_bounds = array<i64: 64, 128>}, {pipeline_mode = #tpu.pipeline_mode<synchronous>, transform_indices = @transform_4, window_bounds = array<i64: 1, 128>}, {pipeline_mode = #tpu.pipeline_mode<synchronous>, transform_indices = @transform_5, window_bounds = array<i64: 128, 64>}, {pipeline_mode = #tpu.pipeline_mode<synchronous>, transform_indices = @transform_6, window_bounds = array<i64: 1, 64>}, {pipeline_mode = #tpu.pipeline_mode<synchronous>, transform_indices = @transform_7, window_bounds = array<i64: 2, 64>}, {pipeline_mode = #tpu.pipeline_mode<synchronous>, transform_indices = @transform_8, window_bounds = array<i64: 2, 64>}, {transform_indices = @transform_9, window_bounds = array<i64: 1, 8, 64>}, {transform_indices = @transform_10, window_bounds = array<i64: 1, 4, 8, 8>}]} {
    %c0 = arith.constant 0 : index
    %c0_0 = arith.constant 0 : index
    %c0_1 = arith.constant 0 : index
    %0 = vector.load %arg1[%c0, %c0_0, %c0_1] : memref<1x8x64xf32, #tpu.memory_space<vmem>>, vector<1x8x64xf32>
    %1 = vector.shape_cast %0 : vector<1x8x64xf32> to vector<8x64xf32>
    %2 = arith.truncf %1 : vector<8x64xf32> to vector<8x64xbf16>
    %c0_2 = arith.constant 0 : index
    %c0_3 = arith.constant 0 : index
    %3 = vector.load %arg2[%c0_2, %c0_3] : memref<64x256xbf16, #tpu.memory_space<vmem>>, vector<64x256xbf16>
    %cst = arith.constant dense<0.000000e+00> : vector<8x256xf32>
    %4 = tpu.matmul %2, %3, %cst {dimension_numbers = #tpu.dot_dimension_numbers<[1], [0], [0], [1], [0, 0, 1, 1], [], []>} : vector<8x64xbf16>, vector<64x256xbf16>, vector<8x256xf32> -> vector<8x256xf32>
    %5 = arith.truncf %4 : vector<8x256xf32> to vector<8x256xbf16>
    %6 = vector.extract_strided_slice %5 {offsets = [0, 0], sizes = [8, 16], strides = [1, 1]} : vector<8x256xbf16> to vector<8x16xbf16>
    %7 = vector.extract_strided_slice %5 {offsets = [0, 64], sizes = [8, 16], strides = [1, 1]} : vector<8x256xbf16> to vector<8x16xbf16>
    %8 = vector.extract_strided_slice %5 {offsets = [0, 128], sizes = [8, 16], strides = [1, 1]} : vector<8x256xbf16> to vector<8x16xbf16>
    %9 = vector.extract_strided_slice %5 {offsets = [0, 192], sizes = [8, 16], strides = [1, 1]} : vector<8x256xbf16> to vector<8x16xbf16>
    %cst_4 = arith.constant dense<0.000000e+00> : vector<8x8xf32>
    %10 = tpu.matmul %6, %7, %cst_4 {dimension_numbers = #tpu.dot_dimension_numbers<[1], [1], [0], [0], [0, 0, 1, 0], [], []>} : vector<8x16xbf16>, vector<8x16xbf16>, vector<8x8xf32> -> vector<8x8xf32>
    %cst_5 = arith.constant dense<0.000000e+00> : vector<8x8xf32>
    %11 = tpu.matmul %6, %8, %cst_5 {dimension_numbers = #tpu.dot_dimension_numbers<[1], [1], [0], [0], [0, 0, 1, 0], [], []>} : vector<8x16xbf16>, vector<8x16xbf16>, vector<8x8xf32> -> vector<8x8xf32>
    %12 = arith.mulf %10, %10 : vector<8x8xf32>
    %13 = arith.mulf %11, %11 : vector<8x8xf32>
    %14 = arith.addf %12, %13 : vector<8x8xf32>
    %15 = math.sqrt %14 : vector<8x8xf32>
    %cst_6 = arith.constant dense<0xFF800000> : vector<8xf32>
    %16 = vector.multi_reduction <maximumf>, %15, %cst_6 [1] : vector<8x8xf32> to vector<8xf32>
    %17 = vector.shape_cast %16 : vector<8xf32> to vector<8x1xf32>
    %18 = vector.broadcast %17 : vector<8x1xf32> to vector<8x8xf32>
    %19 = arith.subf %15, %18 : vector<8x8xf32>
    %20 = math.exp %19 : vector<8x8xf32>
    %cst_7 = arith.constant dense<0.000000e+00> : vector<8xf32>
    %21 = vector.multi_reduction <add>, %20, %cst_7 [1] : vector<8x8xf32> to vector<8xf32>
    %22 = vector.shape_cast %21 : vector<8xf32> to vector<8x1xf32>
    %23 = tpu.reciprocal %22 {approx = true} : vector<8x1xf32> -> vector<8x1xf32>
    %24 = vector.broadcast %23 : vector<8x1xf32> to vector<8x8xf32>
    %25 = arith.mulf %20, %24 : vector<8x8xf32>
    %c0_8 = arith.constant 0 : index
    %c0_9 = arith.constant 0 : index
    %c0_10 = arith.constant 0 : index
    %c0_11 = arith.constant 0 : index
    %26 = vector.load %arg11[%c0_8, %c0_9, %c0_10, %c0_11] : memref<1x4x8x8xf32, #tpu.memory_space<vmem>>, vector<1x1x8x8xf32>
    %27 = vector.shape_cast %26 : vector<1x1x8x8xf32> to vector<8x8xf32>
    %28 = vector.shape_cast %25 : vector<8x8xf32> to vector<1x1x8x8xf32>
    tpu.vector_store %arg11[%c0_8, %c0_9, %c0_10, %c0_11], %28 {strides = array<i32>} : memref<1x4x8x8xf32, #tpu.memory_space<vmem>>, vector<1x1x8x8xf32>,
    %29 = arith.truncf %25 : vector<8x8xf32> to vector<8x8xbf16>
    %cst_12 = arith.constant dense<0.000000e+00> : vector<8x16xf32>
    %30 = tpu.matmul %29, %9, %cst_12 {dimension_numbers = #tpu.dot_dimension_numbers<[1], [0], [0], [1], [0, 0, 1, 1], [], []>} : vector<8x8xbf16>, vector<8x16xbf16>, vector<8x16xf32> -> vector<8x16xf32>
    %31 = arith.truncf %30 : vector<8x16xf32> to vector<8x16xbf16>
    %c0_13 = arith.constant 0 : index
    %c0_14 = arith.constant 0 : index
    %32 = vector.load %arg12[%c0_13, %c0_14] : memref<8x64xbf16, #tpu.memory_space<vmem>>, vector<8x16xbf16>
    tpu.vector_store %arg12[%c0_13, %c0_14], %31 {strides = array<i32>} : memref<8x64xbf16, #tpu.memory_space<vmem>>, vector<8x16xbf16>,
    %33 = vector.extract_strided_slice %5 {offsets = [0, 16], sizes = [8, 16], strides = [1, 1]} : vector<8x256xbf16> to vector<8x16xbf16>
    %34 = vector.extract_strided_slice %5 {offsets = [0, 80], sizes = [8, 16], strides = [1, 1]} : vector<8x256xbf16> to vector<8x16xbf16>
    %35 = vector.extract_strided_slice %5 {offsets = [0, 144], sizes = [8, 16], strides = [1, 1]} : vector<8x256xbf16> to vector<8x16xbf16>
    %36 = vector.extract_strided_slice %5 {offsets = [0, 208], sizes = [8, 16], strides = [1, 1]} : vector<8x256xbf16> to vector<8x16xbf16>
    %cst_15 = arith.constant dense<0.000000e+00> : vector<8x8xf32>
    %37 = tpu.matmul %33, %34, %cst_15 {dimension_numbers = #tpu.dot_dimension_numbers<[1], [1], [0], [0], [0, 0, 1, 0], [], []>} : vector<8x16xbf16>, vector<8x16xbf16>, vector<8x8xf32> -> vector<8x8xf32>
    %cst_16 = arith.constant dense<0.000000e+00> : vector<8x8xf32>
    %38 = tpu.matmul %33, %35, %cst_16 {dimension_numbers = #tpu.dot_dimension_numbers<[1], [1], [0], [0], [0, 0, 1, 0], [], []>} : vector<8x16xbf16>, vector<8x16xbf16>, vector<8x8xf32> -> vector<8x8xf32>
    %39 = arith.mulf %37, %37 : vector<8x8xf32>
    %40 = arith.mulf %38, %38 : vector<8x8xf32>
    %41 = arith.addf %39, %40 : vector<8x8xf32>
    %42 = math.sqrt %41 : vector<8x8xf32>
    %cst_17 = arith.constant dense<0xFF800000> : vector<8xf32>
    %43 = vector.multi_reduction <maximumf>, %42, %cst_17 [1] : vector<8x8xf32> to vector<8xf32>
    %44 = vector.shape_cast %43 : vector<8xf32> to vector<8x1xf32>
    %45 = vector.broadcast %44 : vector<8x1xf32> to vector<8x8xf32>
    %46 = arith.subf %42, %45 : vector<8x8xf32>
    %47 = math.exp %46 : vector<8x8xf32>
    %cst_18 = arith.constant dense<0.000000e+00> : vector<8xf32>
    %48 = vector.multi_reduction <add>, %47, %cst_18 [1] : vector<8x8xf32> to vector<8xf32>
    %49 = vector.shape_cast %48 : vector<8xf32> to vector<8x1xf32>
    %50 = tpu.reciprocal %49 {approx = true} : vector<8x1xf32> -> vector<8x1xf32>
    %51 = vector.broadcast %50 : vector<8x1xf32> to vector<8x8xf32>
    %52 = arith.mulf %47, %51 : vector<8x8xf32>
    %c0_19 = arith.constant 0 : index
    %c1 = arith.constant 1 : index
    %c0_20 = arith.constant 0 : index
    %c0_21 = arith.constant 0 : index
    %53 = vector.load %arg11[%c0_19, %c1, %c0_20, %c0_21] : memref<1x4x8x8xf32, #tpu.memory_space<vmem>>, vector<1x1x8x8xf32>
    %54 = vector.shape_cast %53 : vector<1x1x8x8xf32> to vector<8x8xf32>
    %55 = vector.shape_cast %52 : vector<8x8xf32> to vector<1x1x8x8xf32>
    tpu.vector_store %arg11[%c0_19, %c1, %c0_20, %c0_21], %55 {strides = array<i32>} : memref<1x4x8x8xf32, #tpu.memory_space<vmem>>, vector<1x1x8x8xf32>,
    %56 = arith.truncf %52 : vector<8x8xf32> to vector<8x8xbf16>
    %cst_22 = arith.constant dense<0.000000e+00> : vector<8x16xf32>
    %57 = tpu.matmul %56, %36, %cst_22 {dimension_numbers = #tpu.dot_dimension_numbers<[1], [0], [0], [1], [0, 0, 1, 1], [], []>} : vector<8x8xbf16>, vector<8x16xbf16>, vector<8x16xf32> -> vector<8x16xf32>
    %58 = arith.truncf %57 : vector<8x16xf32> to vector<8x16xbf16>
    %c0_23 = arith.constant 0 : index
    %c16 = arith.constant 16 : index
    %59 = vector.load %arg12[%c0_23, %c16] : memref<8x64xbf16, #tpu.memory_space<vmem>>, vector<8x16xbf16>
    tpu.vector_store %arg12[%c0_23, %c16], %58 {strides = array<i32>} : memref<8x64xbf16, #tpu.memory_space<vmem>>, vector<8x16xbf16>,
    %60 = vector.extract_strided_slice %5 {offsets = [0, 32], sizes = [8, 16], strides = [1, 1]} : vector<8x256xbf16> to vector<8x16xbf16>
    %61 = vector.extract_strided_slice %5 {offsets = [0, 96], sizes = [8, 16], strides = [1, 1]} : vector<8x256xbf16> to vector<8x16xbf16>
    %62 = vector.extract_strided_slice %5 {offsets = [0, 160], sizes = [8, 16], strides = [1, 1]} : vector<8x256xbf16> to vector<8x16xbf16>
    %63 = vector.extract_strided_slice %5 {offsets = [0, 224], sizes = [8, 16], strides = [1, 1]} : vector<8x256xbf16> to vector<8x16xbf16>
    %cst_24 = arith.constant dense<0.000000e+00> : vector<8x8xf32>
    %64 = tpu.matmul %60, %61, %cst_24 {dimension_numbers = #tpu.dot_dimension_numbers<[1], [1], [0], [0], [0, 0, 1, 0], [], []>} : vector<8x16xbf16>, vector<8x16xbf16>, vector<8x8xf32> -> vector<8x8xf32>
    %cst_25 = arith.constant dense<0.000000e+00> : vector<8x8xf32>
    %65 = tpu.matmul %60, %62, %cst_25 {dimension_numbers = #tpu.dot_dimension_numbers<[1], [1], [0], [0], [0, 0, 1, 0], [], []>} : vector<8x16xbf16>, vector<8x16xbf16>, vector<8x8xf32> -> vector<8x8xf32>
    %66 = arith.mulf %64, %64 : vector<8x8xf32>
    %67 = arith.mulf %65, %65 : vector<8x8xf32>
    %68 = arith.addf %66, %67 : vector<8x8xf32>
    %69 = math.sqrt %68 : vector<8x8xf32>
    %cst_26 = arith.constant dense<0xFF800000> : vector<8xf32>
    %70 = vector.multi_reduction <maximumf>, %69, %cst_26 [1] : vector<8x8xf32> to vector<8xf32>
    %71 = vector.shape_cast %70 : vector<8xf32> to vector<8x1xf32>
    %72 = vector.broadcast %71 : vector<8x1xf32> to vector<8x8xf32>
    %73 = arith.subf %69, %72 : vector<8x8xf32>
    %74 = math.exp %73 : vector<8x8xf32>
    %cst_27 = arith.constant dense<0.000000e+00> : vector<8xf32>
    %75 = vector.multi_reduction <add>, %74, %cst_27 [1] : vector<8x8xf32> to vector<8xf32>
    %76 = vector.shape_cast %75 : vector<8xf32> to vector<8x1xf32>
    %77 = tpu.reciprocal %76 {approx = true} : vector<8x1xf32> -> vector<8x1xf32>
    %78 = vector.broadcast %77 : vector<8x1xf32> to vector<8x8xf32>
    %79 = arith.mulf %74, %78 : vector<8x8xf32>
    %c0_28 = arith.constant 0 : index
    %c2 = arith.constant 2 : index
    %c0_29 = arith.constant 0 : index
    %c0_30 = arith.constant 0 : index
    %80 = vector.load %arg11[%c0_28, %c2, %c0_29, %c0_30] : memref<1x4x8x8xf32, #tpu.memory_space<vmem>>, vector<1x1x8x8xf32>
    %81 = vector.shape_cast %80 : vector<1x1x8x8xf32> to vector<8x8xf32>
    %82 = vector.shape_cast %79 : vector<8x8xf32> to vector<1x1x8x8xf32>
    tpu.vector_store %arg11[%c0_28, %c2, %c0_29, %c0_30], %82 {strides = array<i32>} : memref<1x4x8x8xf32, #tpu.memory_space<vmem>>, vector<1x1x8x8xf32>,
    %83 = arith.truncf %79 : vector<8x8xf32> to vector<8x8xbf16>
    %cst_31 = arith.constant dense<0.000000e+00> : vector<8x16xf32>
    %84 = tpu.matmul %83, %63, %cst_31 {dimension_numbers = #tpu.dot_dimension_numbers<[1], [0], [0], [1], [0, 0, 1, 1], [], []>} : vector<8x8xbf16>, vector<8x16xbf16>, vector<8x16xf32> -> vector<8x16xf32>
    %85 = arith.truncf %84 : vector<8x16xf32> to vector<8x16xbf16>
    %c0_32 = arith.constant 0 : index
    %c32 = arith.constant 32 : index
    %86 = vector.load %arg12[%c0_32, %c32] : memref<8x64xbf16, #tpu.memory_space<vmem>>, vector<8x16xbf16>
    tpu.vector_store %arg12[%c0_32, %c32], %85 {strides = array<i32>} : memref<8x64xbf16, #tpu.memory_space<vmem>>, vector<8x16xbf16>,
    %87 = vector.extract_strided_slice %5 {offsets = [0, 48], sizes = [8, 16], strides = [1, 1]} : vector<8x256xbf16> to vector<8x16xbf16>
    %88 = vector.extract_strided_slice %5 {offsets = [0, 112], sizes = [8, 16], strides = [1, 1]} : vector<8x256xbf16> to vector<8x16xbf16>
    %89 = vector.extract_strided_slice %5 {offsets = [0, 176], sizes = [8, 16], strides = [1, 1]} : vector<8x256xbf16> to vector<8x16xbf16>
    %90 = vector.extract_strided_slice %5 {offsets = [0, 240], sizes = [8, 16], strides = [1, 1]} : vector<8x256xbf16> to vector<8x16xbf16>
    %cst_33 = arith.constant dense<0.000000e+00> : vector<8x8xf32>
    %91 = tpu.matmul %87, %88, %cst_33 {dimension_numbers = #tpu.dot_dimension_numbers<[1], [1], [0], [0], [0, 0, 1, 0], [], []>} : vector<8x16xbf16>, vector<8x16xbf16>, vector<8x8xf32> -> vector<8x8xf32>
    %cst_34 = arith.constant dense<0.000000e+00> : vector<8x8xf32>
    %92 = tpu.matmul %87, %89, %cst_34 {dimension_numbers = #tpu.dot_dimension_numbers<[1], [1], [0], [0], [0, 0, 1, 0], [], []>} : vector<8x16xbf16>, vector<8x16xbf16>, vector<8x8xf32> -> vector<8x8xf32>
    %93 = arith.mulf %91, %91 : vector<8x8xf32>
    %94 = arith.mulf %92, %92 : vector<8x8xf32>
    %95 = arith.addf %93, %94 : vector<8x8xf32>
    %96 = math.sqrt %95 : vector<8x8xf32>
    %cst_35 = arith.constant dense<0xFF800000> : vector<8xf32>
    %97 = vector.multi_reduction <maximumf>, %96, %cst_35 [1] : vector<8x8xf32> to vector<8xf32>
    %98 = vector.shape_cast %97 : vector<8xf32> to vector<8x1xf32>
    %99 = vector.broadcast %98 : vector<8x1xf32> to vector<8x8xf32>
    %100 = arith.subf %96, %99 : vector<8x8xf32>
    %101 = math.exp %100 : vector<8x8xf32>
    %cst_36 = arith.constant dense<0.000000e+00> : vector<8xf32>
    %102 = vector.multi_reduction <add>, %101, %cst_36 [1] : vector<8x8xf32> to vector<8xf32>
    %103 = vector.shape_cast %102 : vector<8xf32> to vector<8x1xf32>
    %104 = tpu.reciprocal %103 {approx = true} : vector<8x1xf32> -> vector<8x1xf32>
    %105 = vector.broadcast %104 : vector<8x1xf32> to vector<8x8xf32>
    %106 = arith.mulf %101, %105 : vector<8x8xf32>
    %c0_37 = arith.constant 0 : index
    %c3 = arith.constant 3 : index
    %c0_38 = arith.constant 0 : index
    %c0_39 = arith.constant 0 : index
    %107 = vector.load %arg11[%c0_37, %c3, %c0_38, %c0_39] : memref<1x4x8x8xf32, #tpu.memory_space<vmem>>, vector<1x1x8x8xf32>
    %108 = vector.shape_cast %107 : vector<1x1x8x8xf32> to vector<8x8xf32>
    %109 = vector.shape_cast %106 : vector<8x8xf32> to vector<1x1x8x8xf32>
    tpu.vector_store %arg11[%c0_37, %c3, %c0_38, %c0_39], %109 {strides = array<i32>} : memref<1x4x8x8xf32, #tpu.memory_space<vmem>>, vector<1x1x8x8xf32>,
    %110 = arith.truncf %106 : vector<8x8xf32> to vector<8x8xbf16>
    %cst_40 = arith.constant dense<0.000000e+00> : vector<8x16xf32>
    %111 = tpu.matmul %110, %90, %cst_40 {dimension_numbers = #tpu.dot_dimension_numbers<[1], [0], [0], [1], [0, 0, 1, 1], [], []>} : vector<8x8xbf16>, vector<8x16xbf16>, vector<8x16xf32> -> vector<8x16xf32>
    %112 = arith.truncf %111 : vector<8x16xf32> to vector<8x16xbf16>
    %c0_41 = arith.constant 0 : index
    %c48 = arith.constant 48 : index
    %113 = vector.load %arg12[%c0_41, %c48] : memref<8x64xbf16, #tpu.memory_space<vmem>>, vector<8x16xbf16>
    tpu.vector_store %arg12[%c0_41, %c48], %112 {strides = array<i32>} : memref<8x64xbf16, #tpu.memory_space<vmem>>, vector<8x16xbf16>,
    %c0_42 = arith.constant 0 : index
    %c0_43 = arith.constant 0 : index
    %114 = vector.load %arg12[%c0_42, %c0_43] : memref<8x64xbf16, #tpu.memory_space<vmem>>, vector<8x64xbf16>
    %c0_44 = arith.constant 0 : index
    %c0_45 = arith.constant 0 : index
    %115 = vector.load %arg3[%c0_44, %c0_45] : memref<64x64xbf16, #tpu.memory_space<vmem>>, vector<64x64xbf16>
    %cst_46 = arith.constant dense<0.000000e+00> : vector<8x64xf32>
    %116 = tpu.matmul %114, %115, %cst_46 {dimension_numbers = #tpu.dot_dimension_numbers<[1], [0], [0], [1], [0, 0, 1, 1], [], []>} : vector<8x64xbf16>, vector<64x64xbf16>, vector<8x64xf32> -> vector<8x64xf32>
    %c0_47 = arith.constant 0 : index
    %c0_48 = arith.constant 0 : index
    %117 = vector.load %arg8[%c0_47, %c0_48] : memref<2x64xf32, #tpu.memory_space<vmem>>, vector<2x64xf32>
    %118 = arith.addf %116, %1 : vector<8x64xf32>
    %119 = vector.extract_strided_slice %117 {offsets = [0, 0], sizes = [1, 64], strides = [1, 1]} : vector<2x64xf32> to vector<1x64xf32>
    %120 = vector.extract_strided_slice %117 {offsets = [1, 0], sizes = [1, 64], strides = [1, 1]} : vector<2x64xf32> to vector<1x64xf32>
    %121 = vector.extract_strided_slice %118 {offsets = [0, 0], sizes = [8, 32], strides = [1, 1]} : vector<8x64xf32> to vector<8x32xf32>
    %cst_49 = arith.constant dense<0.000000e+00> : vector<8xf32>
    %122 = vector.multi_reduction <add>, %121, %cst_49 [1] : vector<8x32xf32> to vector<8xf32>
    %123 = vector.shape_cast %122 : vector<8xf32> to vector<8x1xf32>
    %cst_50 = arith.constant 3.200000e+01 : f32
    %124 = vector.broadcast %cst_50 : f32 to vector<8x1xf32>
    %125 = arith.divf %123, %124 : vector<8x1xf32>
    %126 = vector.broadcast %125 : vector<8x1xf32> to vector<8x32xf32>
    %127 = arith.subf %121, %126 : vector<8x32xf32>
    %128 = arith.mulf %127, %127 : vector<8x32xf32>
    %cst_51 = arith.constant dense<0.000000e+00> : vector<8xf32>
    %129 = vector.multi_reduction <add>, %128, %cst_51 [1] : vector<8x32xf32> to vector<8xf32>
    %130 = vector.shape_cast %129 : vector<8xf32> to vector<8x1xf32>
    %cst_52 = arith.constant 3.200000e+01 : f32
    %131 = vector.broadcast %cst_52 : f32 to vector<8x1xf32>
    %132 = arith.divf %130, %131 : vector<8x1xf32>
    %cst_53 = arith.constant 9.99999997E-7 : f32
    %133 = vector.broadcast %cst_53 : f32 to vector<8x1xf32>
    %134 = arith.addf %132, %133 : vector<8x1xf32>
    %135 = math.rsqrt %134 : vector<8x1xf32>
    %136 = vector.broadcast %135 : vector<8x1xf32> to vector<8x32xf32>
    %137 = arith.mulf %127, %136 : vector<8x32xf32>
    %138 = vector.extract_strided_slice %118 {offsets = [0, 32], sizes = [8, 32], strides = [1, 1]} : vector<8x64xf32> to vector<8x32xf32>
    %cst_54 = arith.constant dense<0.000000e+00> : vector<8xf32>
    %139 = vector.multi_reduction <add>, %138, %cst_54 [1] : vector<8x32xf32> to vector<8xf32>
    %140 = vector.shape_cast %139 : vector<8xf32> to vector<8x1xf32>
    %cst_55 = arith.constant 3.200000e+01 : f32
    %141 = vector.broadcast %cst_55 : f32 to vector<8x1xf32>
    %142 = arith.divf %140, %141 : vector<8x1xf32>
    %143 = vector.broadcast %142 : vector<8x1xf32> to vector<8x32xf32>
    %144 = arith.subf %138, %143 : vector<8x32xf32>
    %145 = arith.mulf %144, %144 : vector<8x32xf32>
    %cst_56 = arith.constant dense<0.000000e+00> : vector<8xf32>
    %146 = vector.multi_reduction <add>, %145, %cst_56 [1] : vector<8x32xf32> to vector<8xf32>
    %147 = vector.shape_cast %146 : vector<8xf32> to vector<8x1xf32>
    %cst_57 = arith.constant 3.200000e+01 : f32
    %148 = vector.broadcast %cst_57 : f32 to vector<8x1xf32>
    %149 = arith.divf %147, %148 : vector<8x1xf32>
    %cst_58 = arith.constant 9.99999997E-7 : f32
    %150 = vector.broadcast %cst_58 : f32 to vector<8x1xf32>
    %151 = arith.addf %149, %150 : vector<8x1xf32>
    %152 = math.rsqrt %151 : vector<8x1xf32>
    %153 = vector.broadcast %152 : vector<8x1xf32> to vector<8x32xf32>
    %154 = arith.mulf %144, %153 : vector<8x32xf32>
    %155 = tpu.concatenate %137, %154 in 1 : vector<8x32xf32>, vector<8x32xf32> -> vector<8x64xf32>
    %156 = vector.broadcast %119 : vector<1x64xf32> to vector<8x64xf32>
    %157 = arith.mulf %155, %156 : vector<8x64xf32>
    %158 = vector.broadcast %120 : vector<1x64xf32> to vector<8x64xf32>
    %159 = arith.addf %157, %158 : vector<8x64xf32>
    %160 = arith.truncf %159 : vector<8x64xf32> to vector<8x64xbf16>
    %c0_59 = arith.constant 0 : index
    %c0_60 = arith.constant 0 : index
    %161 = vector.load %arg4[%c0_59, %c0_60] : memref<64x128xbf16, #tpu.memory_space<vmem>>, vector<64x128xbf16>
    %cst_61 = arith.constant dense<0.000000e+00> : vector<8x128xf32>
    %162 = tpu.matmul %160, %161, %cst_61 {dimension_numbers = #tpu.dot_dimension_numbers<[1], [0], [0], [1], [0, 0, 1, 1], [], []>} : vector<8x64xbf16>, vector<64x128xbf16>, vector<8x128xf32> -> vector<8x128xf32>
    %c0_62 = arith.constant 0 : index
    %c0_63 = arith.constant 0 : index
    %163 = vector.load %arg5[%c0_62, %c0_63] : memref<1x128xf32, #tpu.memory_space<vmem>>, vector<1x128xf32>
    %164 = vector.broadcast %163 : vector<1x128xf32> to vector<8x128xf32>
    %165 = arith.addf %162, %164 : vector<8x128xf32>
    %166 = arith.truncf %165 : vector<8x128xf32> to vector<8x128xbf16>
    %c0_64 = arith.constant 0 : index
    %c0_65 = arith.constant 0 : index
    %167 = vector.load %arg6[%c0_64, %c0_65] : memref<128x64xbf16, #tpu.memory_space<vmem>>, vector<128x64xbf16>
    %cst_66 = arith.constant dense<0.000000e+00> : vector<8x64xf32>
    %168 = tpu.matmul %166, %167, %cst_66 {dimension_numbers = #tpu.dot_dimension_numbers<[1], [0], [0], [1], [0, 0, 1, 1], [], []>} : vector<8x128xbf16>, vector<128x64xbf16>, vector<8x64xf32> -> vector<8x64xf32>
    %c0_67 = arith.constant 0 : index
    %c0_68 = arith.constant 0 : index
    %169 = vector.load %arg7[%c0_67, %c0_68] : memref<1x64xf32, #tpu.memory_space<vmem>>, vector<1x64xf32>
    %170 = vector.broadcast %169 : vector<1x64xf32> to vector<8x64xf32>
    %171 = arith.addf %168, %170 : vector<8x64xf32>
    %c0_69 = arith.constant 0 : index
    %c0_70 = arith.constant 0 : index
    %172 = vector.load %arg9[%c0_69, %c0_70] : memref<2x64xf32, #tpu.memory_space<vmem>>, vector<2x64xf32>
    %173 = arith.addf %171, %159 : vector<8x64xf32>
    %174 = vector.extract_strided_slice %172 {offsets = [0, 0], sizes = [1, 64], strides = [1, 1]} : vector<2x64xf32> to vector<1x64xf32>
    %175 = vector.extract_strided_slice %172 {offsets = [1, 0], sizes = [1, 64], strides = [1, 1]} : vector<2x64xf32> to vector<1x64xf32>
    %176 = vector.extract_strided_slice %173 {offsets = [0, 0], sizes = [8, 32], strides = [1, 1]} : vector<8x64xf32> to vector<8x32xf32>
    %cst_71 = arith.constant dense<0.000000e+00> : vector<8xf32>
    %177 = vector.multi_reduction <add>, %176, %cst_71 [1] : vector<8x32xf32> to vector<8xf32>
    %178 = vector.shape_cast %177 : vector<8xf32> to vector<8x1xf32>
    %cst_72 = arith.constant 3.200000e+01 : f32
    %179 = vector.broadcast %cst_72 : f32 to vector<8x1xf32>
    %180 = arith.divf %178, %179 : vector<8x1xf32>
    %181 = vector.broadcast %180 : vector<8x1xf32> to vector<8x32xf32>
    %182 = arith.subf %176, %181 : vector<8x32xf32>
    %183 = arith.mulf %182, %182 : vector<8x32xf32>
    %cst_73 = arith.constant dense<0.000000e+00> : vector<8xf32>
    %184 = vector.multi_reduction <add>, %183, %cst_73 [1] : vector<8x32xf32> to vector<8xf32>
    %185 = vector.shape_cast %184 : vector<8xf32> to vector<8x1xf32>
    %cst_74 = arith.constant 3.200000e+01 : f32
    %186 = vector.broadcast %cst_74 : f32 to vector<8x1xf32>
    %187 = arith.divf %185, %186 : vector<8x1xf32>
    %cst_75 = arith.constant 9.99999997E-7 : f32
    %188 = vector.broadcast %cst_75 : f32 to vector<8x1xf32>
    %189 = arith.addf %187, %188 : vector<8x1xf32>
    %190 = math.rsqrt %189 : vector<8x1xf32>
    %191 = vector.broadcast %190 : vector<8x1xf32> to vector<8x32xf32>
    %192 = arith.mulf %182, %191 : vector<8x32xf32>
    %193 = vector.extract_strided_slice %173 {offsets = [0, 32], sizes = [8, 32], strides = [1, 1]} : vector<8x64xf32> to vector<8x32xf32>
    %cst_76 = arith.constant dense<0.000000e+00> : vector<8xf32>
    %194 = vector.multi_reduction <add>, %193, %cst_76 [1] : vector<8x32xf32> to vector<8xf32>
    %195 = vector.shape_cast %194 : vector<8xf32> to vector<8x1xf32>
    %cst_77 = arith.constant 3.200000e+01 : f32
    %196 = vector.broadcast %cst_77 : f32 to vector<8x1xf32>
    %197 = arith.divf %195, %196 : vector<8x1xf32>
    %198 = vector.broadcast %197 : vector<8x1xf32> to vector<8x32xf32>
    %199 = arith.subf %193, %198 : vector<8x32xf32>
    %200 = arith.mulf %199, %199 : vector<8x32xf32>
    %cst_78 = arith.constant dense<0.000000e+00> : vector<8xf32>
    %201 = vector.multi_reduction <add>, %200, %cst_78 [1] : vector<8x32xf32> to vector<8xf32>
    %202 = vector.shape_cast %201 : vector<8xf32> to vector<8x1xf32>
    %cst_79 = arith.constant 3.200000e+01 : f32
    %203 = vector.broadcast %cst_79 : f32 to vector<8x1xf32>
    %204 = arith.divf %202, %203 : vector<8x1xf32>
    %cst_80 = arith.constant 9.99999997E-7 : f32
    %205 = vector.broadcast %cst_80 : f32 to vector<8x1xf32>
    %206 = arith.addf %204, %205 : vector<8x1xf32>
    %207 = math.rsqrt %206 : vector<8x1xf32>
    %208 = vector.broadcast %207 : vector<8x1xf32> to vector<8x32xf32>
    %209 = arith.mulf %199, %208 : vector<8x32xf32>
    %210 = tpu.concatenate %192, %209 in 1 : vector<8x32xf32>, vector<8x32xf32> -> vector<8x64xf32>
    %211 = vector.broadcast %174 : vector<1x64xf32> to vector<8x64xf32>
    %212 = arith.mulf %210, %211 : vector<8x64xf32>
    %213 = vector.broadcast %175 : vector<1x64xf32> to vector<8x64xf32>
    %214 = arith.addf %212, %213 : vector<8x64xf32>
    %c0_81 = arith.constant 0 : index
    %c0_82 = arith.constant 0 : index
    %c0_83 = arith.constant 0 : index
    %215 = vector.load %arg10[%c0_81, %c0_82, %c0_83] : memref<1x8x64xf32, #tpu.memory_space<vmem>>, vector<1x8x64xf32>
    %216 = vector.shape_cast %215 : vector<1x8x64xf32> to vector<8x64xf32>
    %217 = vector.shape_cast %214 : vector<8x64xf32> to vector<1x8x64xf32>
    tpu.vector_store %arg10[%c0_81, %c0_82, %c0_83], %217 {strides = array<i32>} : memref<1x8x64xf32, #tpu.memory_space<vmem>>, vector<1x8x64xf32>,
    return
  }
  func.func @transform_0(%arg0: i32) -> (i32, i32, i32) {
    %c0_i32 = arith.constant 0 : i32
    %c0_i32_0 = arith.constant 0 : i32
    %c0_i32_1 = arith.constant 0 : i32
    return %arg0, %c0_i32, %c0_i32_0 : i32, i32, i32
  }
  func.func @transform_1(%arg0: i32) -> (i32, i32) {
    %c0_i32 = arith.constant 0 : i32
    %c0_i32_0 = arith.constant 0 : i32
    %c0_i32_1 = arith.constant 0 : i32
    return %c0_i32, %c0_i32_0 : i32, i32
  }
  func.func @transform_2(%arg0: i32) -> (i32, i32) {
    %c0_i32 = arith.constant 0 : i32
    %c0_i32_0 = arith.constant 0 : i32
    %c0_i32_1 = arith.constant 0 : i32
    return %c0_i32, %c0_i32_0 : i32, i32
  }
  func.func @transform_3(%arg0: i32) -> (i32, i32) {
    %c0_i32 = arith.constant 0 : i32
    %c0_i32_0 = arith.constant 0 : i32
    %c0_i32_1 = arith.constant 0 : i32
    return %c0_i32, %c0_i32_0 : i32, i32
  }
  func.func @transform_4(%arg0: i32) -> (i32, i32) {
    %c0_i32 = arith.constant 0 : i32
    %c0_i32_0 = arith.constant 0 : i32
    %c0_i32_1 = arith.constant 0 : i32
    return %c0_i32, %c0_i32_0 : i32, i32
  }
  func.func @transform_5(%arg0: i32) -> (i32, i32) {
    %c0_i32 = arith.constant 0 : i32
    %c0_i32_0 = arith.constant 0 : i32
    %c0_i32_1 = arith.constant 0 : i32
    return %c0_i32, %c0_i32_0 : i32, i32
  }
  func.func @transform_6(%arg0: i32) -> (i32, i32) {
    %c0_i32 = arith.constant 0 : i32
    %c0_i32_0 = arith.constant 0 : i32
    %c0_i32_1 = arith.constant 0 : i32
    return %c0_i32, %c0_i32_0 : i32, i32
  }
  func.func @transform_7(%arg0: i32) -> (i32, i32) {
    %c0_i32 = arith.constant 0 : i32
    %c0_i32_0 = arith.constant 0 : i32
    %c0_i32_1 = arith.constant 0 : i32
    return %c0_i32, %c0_i32_0 : i32, i32
  }
  func.func @transform_8(%arg0: i32) -> (i32, i32) {
    %c0_i32 = arith.constant 0 : i32
    %c0_i32_0 = arith.constant 0 : i32
    %c0_i32_1 = arith.constant 0 : i32
    return %c0_i32, %c0_i32_0 : i32, i32
  }
  func.func @transform_9(%arg0: i32) -> (i32, i32, i32) {
    %c0_i32 = arith.constant 0 : i32
    %c0_i32_0 = arith.constant 0 : i32
    %c0_i32_1 = arith.constant 0 : i32
    return %arg0, %c0_i32, %c0_i32_0 : i32, i32, i32
  }
  func.func @transform_10(%arg0: i32) -> (i32, i32, i32, i32) {
    %c0_i32 = arith.constant 0 : i32
    %c0_i32_0 = arith.constant 0 : i32
    %c0_i32_1 = arith.constant 0 : i32
    %c0_i32_2 = arith.constant 0 : i32
    return %arg0, %c0_i32, %c0_i32_0, %c0_i32_1 : i32, i32, i32, i32
  }
}

</mosaic_0001>

<bundles_post_ra>
// kernel: tpu_custom_call.1
= control target key start
LH: loop header
LB: loop body
LE: loop exit
PB: predicated region body
PF: predicated region fallthrough
CT: control target
= control target key end

     0   :  { %16 = vsyncpa [#allocation4], 0  ;;  %s2787_s0 = inlined_call_operand.hbm [shape: f32[2,8,64], index: 0, kind: input, shape index: {}]   ;;  %s2788_s1 = inlined_call_operand.vmem [shape: bf16[64,256], index: 1, kind: input, shape index: {}]   ;;  %s2789_s2 = inlined_call_operand.vmem [shape: bf16[64,64], index: 2, kind: input, shape index: {}]   ;;  %s2790_s3 = inlined_call_operand.hbm [shape: bf16[64,128], index: 3, kind: input, shape index: {}]   ;;  %s2791_s4 = inlined_call_operand.vmem [shape: f32[1,128], index: 4, kind: input, shape index: {}]   ;;  %s2792_s5 = inlined_call_operand.vmem [shape: bf16[128,64], index: 5, kind: input, shape index: {}]   ;;  %s2793_s6 = inlined_call_operand.vmem [shape: f32[1,64], index: 6, kind: input, shape index: {}]   ;;  %s2794_s7 = inlined_call_operand.vmem [shape: f32[2,64], index: 7, kind: input, shape index: {}]   ;;  %s2795_s8 = inlined_call_operand.vmem [shape: f32[2,64], index: 8, kind: input, shape index: {}]   ;;  %s2796_s9 = inlined_call_operand.hbm [shape: f32[2,8,64], index: 9, kind: output, shape index: {0}]   ;;  %s2797_s10 = inlined_call_operand.hbm [shape: f32[2,4,8,8], index: 10, kind: output, shape index: {1}]  }
   0x1   :  { %18 = vsyncpa [#allocation4 + $0x1], 0 }
   0x2   :  { %19 = vsyncpa [#allocation7], 0 }
   0x3   :  { %20 = vsyncpa [#allocation5], 0 }
   0x4   :  { %22 = vsyncpa [#allocation5 + $0x1], 0 }
   0x5   :  { %23 = vsyncpa [#allocation10], 0 }
   0x6   :  { %25 = vsyncpa [#allocation10 + $0x1], 0  ;;  %s2310_s13 = smov 0   ;;  %s2312_s14 = smov 0  }
   0x7   :  { %s2314_s15 = smov 0   ;;  %s2316_s16 = smov 0  }
   0x8 LB: > { %2805 = sst [smem:[#allocation15_spill]] %s2223_s13  ;;  %s2331_s17 = sadd.s32 4294967295, %s2235_s16   ;;  %s2235_s16 = sphi %s2316_s16, %s2823_s16   ;;  %s2231_s15 = sphi %s2314_s15, %s2826_s15   ;;  %s2227_s14 = sphi %s2312_s14, %s2825_s14   ;;  %s2223_s13 = sphi %s2310_s13, %s2824_s13  }
   0x9   : > { %s1711_s18 = sadd.s32 4294967294, %s2235_s16   ;;  %p51_p0 = scmp.ne.s32.totalorder %s2227_s14, %s2223_s13 }
   0xa   : > { %p2800_p1 = scmp.eq.s32.totalorder %s2331_s17, 0  ;;  %p249_p3 = scmp.eq.s32.totalorder %s1711_s18, 1 }
   0xb   : > { %p1712_p5 = scmp.ge.s32.totalorder %s2235_s16, 1  ;;  %p282_p7 = scmp.lt.s32.totalorder %s2235_s16, 3 }
   0xc   : > { %p2340_p4 = por %p2800_p1, %p51_p0  ;;  %p2345_p6 = por %p249_p3, %p51_p0 }
   0xd   : > { %p2350_p8 = pnand %p1712_p5, %p282_p7  ;;  %s2237_s22 = smov [#allocation6]  }
   0xe   : > { %s2806_s19 = scalar_select %p2340_p4, 1, 0 }
   0xf   : > { %s2807_s20 = scalar_select %p2345_p6, 1, 0 }
  0x10   : > { %s2809_s21 = scalar_select %p2350_p8, 1, 0 }
  0x11   : > { %2808 = sst [smem:[#allocation16_spill]] %s2807_s20  ;;  %s300_s23 = sshll.u32 %s2237_s22, 4  ;;  %s2354_s23 = int_to_ptr.vmem [resolvable:$true] %s300_s23 }
  0x12   : > { %p1949_p9 = pneg %p2350_p8  ;;  %s2366_s25 = sadd.s32 1, %s2235_s16  }
  0x13   : > { %2811 = sst [smem:[#allocation17_spill]] %s2366_s25  ;;  %s38_s26 = sadd.s32 1, %s2231_s15 }
  0x14   : > { %p2361_p11 = pnand %p1949_p9, %p2800_p1  ;;  %s35_s27 = ssub.s32 %s2235_s16, %s2366_s25 }
  0x15   : > { %s2075_s30 = scalar_lea.hbm %s2790_s3, 512 }
  0x16   : > { %p2076_p12 = scmp.ne.s32.totalorder %s2790_s3, %s2075_s30  ;;  %p2077_p13 = pneg %p2361_p11 }
  0x17   : > { %p2082_p5 = scmp.lt.u32.totalorder %s2075_s30, %s2790_s3 }
  0x18   : > { %p2078_p0 = pnand %p2077_p13, %p2076_p12 }
  0x1a   : > { %p2079_p3 = pneg %p2078_p0 }
  0x1c   : > { %p2084_p7 = pnand %p2082_p5, %p2079_p3 }
  0x1e   : > { %2087 = shalt.err (!%p2084_p7)
}
  0x1f   : > { %s2088_s25 = scalar_lea.vmem %s2354_s23, 512  ;;  %p2096_p2 = scmp.lt.s32.totalorder %s2354_s23, %s2354_s23 }
  0x20   : > { %p2089_p9 = scmp.ne.s32.totalorder %s2354_s23, %s2088_s25  ;;  %p2097_p6 = scmp.lt.s32.totalorder %s2088_s25, %s2088_s25 }
  0x22   : > { %p2091_p10 = pnand %p2089_p9, %p2077_p13  ;;  %p2098_p4 = por %p2097_p6, %p2096_p2 }
  0x24   : > { %p2092_p1 = pneg %p2091_p10 }
  0x26   : > { %p2099_p8 = pnand %p2098_p4, %p2092_p1 }
  0x28   : > { %2102 = shalt.err (!%p2099_p8)
}
  0x29   : > { %s2238_s28 = smov 64   ;;  %s2239_s29 = smov 4  }
  0x2a   : > { %1952 = dma.hbm_to_vmem [thread:$0]  (!%p2361_p11), %s2790_s3, 512, %s2354_s23, [#allocation7], %s2238_s28, %s2238_s28, %s2239_s29  }
  0x2b   : > { %p36_p2 = scmp.eq.s32.totalorder %s35_s27, 0  ;;  %p45_p1 = scmp.ne.s32.totalorder %s2231_s15, %s2227_s14 }
  0x2c   : > { %p46_p4 = scmp.eq.s32.totalorder %s2235_s16, 0  ;;  %p1965_p6 = scmp.lt.s32.totalorder %s2235_s16, 2 }
  0x2d   : > { %s2397_s25 = scalar_select %p36_p2, %s2231_s15, %s38_s26  }
  0x2e   : > { %p47_p8 = por %p46_p4, %p45_p1  ;;  %p2812_p10 = scmp.eq.s32.totalorder %s2331_s17, 1 }
  0x2f   : > { %s329_s18 = sand.u32 1, %s2231_s15   ;;  %s1716_s22 = sshll.u32 %s2235_s16, 7 }
  0x30   : > { %p2401_p12 = por %p2812_p10, %p45_p1  ;;  %s1715_s20 = sshll.u32 %s329_s18, 3 }
  0x31   : > { %s2410_s30 = scalar_lea.hbm %s2787_s0, %s1716_s22  ;;  %s333_s23 = scalar_lea.vmem [#allocation3], %s1715_s20 }
  0x32   : > { %s340_s26 = sshll.u32 %s333_s23, 4  ;;  %p2412_p11 = pnand %p1965_p6, %p47_p8  ;;  %s2416_s26 = int_to_ptr.vmem [resolvable:$true] %s340_s26 }
  0x33   : > { %s330_s28 = scalar_lea.sflag [#allocation4], %s329_s18  ;;  %s2103_s29 = scalar_lea.hbm %s2410_s30, 128 }
  0x34   : > { %p2104_p13 = scmp.ne.s32.totalorder %s2410_s30, %s2103_s29  ;;  %p2105_p0 = pneg %p2412_p11 }
  0x35   : > { %s2108_s11 = scalar_lea.hbm %s2787_s0, 256  ;;  %p2109_p7 = scmp.lt.u32.totalorder %s2410_s30, %s2787_s0 }
  0x36   : > { %p2106_p3 = pnand %p2105_p0, %p2104_p13  ;;  %p2110_p9 = scmp.lt.u32.totalorder %s2108_s11, %s2103_s29 }
  0x37   : > { %p2112_p1 = scmp.lt.u32.totalorder %s2103_s29, %s2410_s30 }
  0x38   : > { %p2107_p5 = pneg %p2106_p3  ;;  %p2111_p2 = por %p2110_p9, %p2109_p7 }
  0x3a   : > { %p2113_p4 = por %p2112_p1, %p2111_p2 }
  0x3c   : > { %p2114_p6 = pnand %p2113_p4, %p2107_p5 }
  0x3e   : > { %2117 = shalt.err (!%p2114_p6)
}
  0x3f   : > { %s2118_s18 = scalar_lea.vmem %s2416_s26, 128  ;;  %s2240_s23 = smov [#allocation3]  }
  0x40   : > { %p2119_p8 = scmp.ne.s32.totalorder %s2416_s26, %s2118_s18  ;;  %s2123_s13 = sshll.u32 %s2240_s23, 4  ;;  %s2124_s13 = int_to_ptr.vmem [resolvable:$false] %s2123_s13 }
  0x41   : > { %s2125_s20 = scalar_lea.vmem %s2124_s13, 256  ;;  %p2126_p3 = scmp.lt.s32.totalorder %s2416_s26, %s2124_s13 }
  0x42   : > { %p2121_p10 = pnand %p2119_p8, %p2105_p0  ;;  %p2127_p7 = scmp.lt.s32.totalorder %s2125_s20, %s2118_s18 }
  0x44   : > { %p2122_p13 = pneg %p2121_p10  ;;  %p2128_p9 = por %p2127_p7, %p2126_p3 }
  0x46   : > { %p2129_p2 = pnand %p2128_p9, %p2122_p13 }
  0x48   : > { %2132 = shalt.err (!%p2129_p2)
}
  0x49   : > { %1956 = dma.hbm_to_vmem [thread:$0]  (!%p2412_p11), %s2410_s30, 128, %s2416_s26, %s330_s28  }
  0x4a   : > { %p2815_p5 = scmp.ne.s32.totalorder %s2809_s21, 0 }
  0x4b   : > { %s2446_s29 = sand.u32 (!%p2815_p5), 1, %s2227_s14   ;;  %p2816_p0 = scmp.ne.s32.totalorder (!%p2815_p5), %s2806_s19, 0 }
  0x4c   : > { %349 = sbr.rel (%p2815_p5) target bundleno = 4748 (0x128c), region = 56  ;;  %s1718_s11 = sshll.u32 (!%p2815_p5), %s2446_s29, 3 }
  0x4d   : > { %s352_s22 = scalar_lea.sflag (!%p2815_p5), [#allocation4], %s2446_s29  ;;  %s355_s24 = scalar_lea.vmem (!%p2815_p5), [#allocation3], %s1718_s11 }
  0x53   : > { %2206 = dma.done.wait (%p2816_p0), %s352_s22, 128  }
  0x54   : > { %2208 = vsyncadd (%p2816_p0), %s352_s22, 4294967168  ;;  %p2817_p11 = scmp.eq.s32.totalorder %s2331_s17, 0 }
  0x56   : > { %2210 = dma.done.wait (%p2817_p11), [#allocation7], 512   ;;  %p2818_p1 = pmov %p2817_p11 }
  0x57   : > { %v2241_v0 = vmov 0   ;;  %v2015_v1 = vld [vmem:[%s2788_s1 + $0x4] ss:$8 sps:$4 sm:$0xff]   ;;  %v2017_v2 = vld [vmem:[%s2788_s1] ss:$8 sps:$4 sm:$0xff]   ;;  %vm452_vm0 = vcmask 523264  }
  0x58   : > { %2212 = vsyncadd (%p2818_p1), [#allocation7], 4294966784  ;;  %488 = vmatprep.mubr.bf16.mxu1 %v2241_v0  ;;  %456 = vmatprep.subr.bf16.mxu1 %v2015_v1  ;;  %v2018_v3 = vld [vmem:[%s2788_s1 + $0x14] ss:$8 sps:$4 sm:$0xff]   ;;  %v2020_v4 = vld [vmem:[%s2788_s1 + $0x10] ss:$8 sps:$4 sm:$0xff]  }
  0x59   : > { %457 = vmatpush1.bf16.msra.mxu1 %v2017_v2  ;;  %v2021_v5 = vld [vmem:[%s2788_s1 + $0x24] ss:$8 sps:$4 sm:$0xff]   ;;  %v2023_v6 = vld [vmem:[%s2788_s1 + $0x20] ss:$8 sps:$4 sm:$0xff]   ;;  %v2024_v7 = vld [vmem:[%s2788_s1 + $0x34] ss:$8 sps:$4 sm:$0xff]  }
  0x5a   : > { %458 = vmatprep.subr.bf16.mxu1 %v2018_v3  ;;  %v2026_v8 = vld [vmem:[%s2788_s1 + $0x30] ss:$8 sps:$4 sm:$0xff]   ;;  %v2242_v11 = vmov 0.0   ;;  %vm2243_vm1 = vmmov 0   ;;  %s2245_s19 = smov 48   ;;  %vm622_vm2 = vcmask 1043456  }
  0x5b   : > { %v2484_v9 = vld [vmem:[%s355_s24] sm:$0xff]  ;;  %1835 = vmatprep.subr.bf16.mxu0 %v2242_v11  ;;  %1837 = vmatprep.mubr.msk.bf16.mxu0 %vm2243_vm1, %v2242_v11  ;;  %s2244_s24 = smov 64   ;;  %vm502_vm3 = vcmask 130048   ;;  %vm602_vm5 = vcmask 64512   ;;  %s2246_s18 = smov 32   ;;  %vm667_vm7 = vcmask 125952  }
  0x5c   : > { %v403_v10 = vpack.c.bf16 %v2484_v9, %v2484_v9  ;;  %s2247_s23 = smov 112   ;;  %s1721_s13 = sshll.u32 %s2446_s29, 5  ;;  %vm843_vm14 = vcmask 257152   ;;  %vm1019_vm15 = vcmask 388352  }
  0x5d   : > { %459 = vmatpush1.bf16.msra.mxu1 %v2020_v4  ;;  %s2534_s20 = scalar_lea.vmem [#allocation9], %s1721_s13  ;;  %s2248_s22 = smov 96  }
  0x5e   : > { %460 = vmatprep.subr.bf16.mxu1 %v2021_v5  ;;  %s2249_s21 = smov 16   ;;  %s2250_s30 = smov 80  }
  0x5f   : > { %s1779_s26 = sshll.u32 %s2331_s17, 9  ;;  %s1596_s27 = sshll.u32 %s2534_s20, 4  ;;  %s2702_s27 = int_to_ptr.vmem [resolvable:$true] %s1596_s27 }
  0x60   : > { %s2133_s13 = scalar_lea.vmem %s2702_s27, 512 }
  0x61   : > { %461 = vmatpush1.bf16.msra.mxu1 %v2023_v6  ;;  %p2134_p4 = scmp.ne.s32.totalorder %s2702_s27, %s2133_s13 }
  0x62   : > { %462 = vmatprep.subr.bf16.mxu1 %v2024_v7 }
  0x63   : > { %p2135_p6 = pnand %p2134_p4, %p2401_p12 }
  0x65   : > { %463 = vmatpush1.bf16.msra.mxu1 %v2026_v8  ;;  %p2136_p8 = pneg %p2135_p6 }
  0x66   : > { %1823 = vmatprep.subr.bf16.mxu1 %v2242_v11 }
  0x68   : > { %1730 = vmatmul.mubr.msk.bf16.vlgmr.msra.gmra.mrb[0].mxu1 %vm452_vm0, %v403_v10 }
  0x69   : > { %1825 = vmatprep.mubr.msk.bf16.mxu1 %vm2243_vm1, %v2242_v11 }
 0x13b   : > { %v490_v12 = vpop.f32.mrb[0].mxu1 }
 0x13c   : > { %v2495_v13 = vpack.c.bf16 %v490_v12, %v490_v12  ;;  %v492_v14 = vpop.f32.mrb[1].mxu1 }
 0x13d   : > { %v2497_v15 = vpack.c.bf16 %v492_v14, %v492_v14  ;;  %v494_v16 = vpop.f32.mrb[2].mxu1 }
 0x13e   : > { %500 = vrot.lane.b32.xlu0 %v2495_v13, %s2244_s24  ;;  %v495_v17 = vpop.f32.mrb[3].mxu1 }
 0x13f   : > { %617 = vrot.lane.b32.xlu1 %v2497_v15, %s2244_s24  ;;  %v550_v22 = vsel %vm502_vm3, %v2497_v15, 0 }
 0x143   : > { %671 = vrot.lane.b32.xlu1 %v2495_v13, %s2245_s19 }
 0x1b0   : > { %v501_v18 = vpop.permute.xlu0 %500 }
 0x1b1   : > { %v507_v19 = vsel %vm502_vm3, %v501_v18, 0  ;;  %v618_v20 = vpop.permute.xlu1 %617 }
 0x1b2   : > { %1824 = vmatpush3.bf16.xpose.msra.mxu1 %v507_v19  ;;  %v624_v21 = vsel %vm622_vm2, %v618_v20, 0 }
 0x1b3   : > { %1836 = vmatpush3.bf16.msra.mxu0 %v624_v21  ;;  %1829 = vmatprep.subr.bf16.mxu1 %v2242_v11 }
 0x1b4   : > { %1847 = vmatprep.subr.bf16.mxu0 %v2242_v11 }
 0x1b5   : > { %v672_v23 = vpop.permute.xlu1 %671 }
 0x1b6   : > { %v677_v24 = vsel %vm502_vm3, %v672_v23, 0 }
 0x1b9   : > { %1826 = vmatmul.mubr.msk.bf16.vlgmr.msra.gmra.mrb[4].mxu1 %vm502_vm3, %v2495_v13 }
 0x1ba   : > { %1830 = vmatpush3.bf16.xpose.msra.mxu1 %v550_v22  ;;  %1831 = vmatprep.mubr.msk.bf16.mxu1 %vm2243_vm1, %v2242_v11 }
 0x1bb   : > { %1841 = vmatprep.subr.bf16.mxu1 %v2242_v11 }
 0x1c1   : > { %1832 = vmatmul.mubr.msk.bf16.vlgmr.msra.gmra.mrb[8].mxu1 %vm502_vm3, %v2495_v13 }
 0x1c2   : > { %1842 = vmatpush3.bf16.xpose.msra.mxu1 %v677_v24  ;;  %1843 = vmatprep.mubr.msk.bf16.mxu1 %vm2243_vm1, %v2242_v11 }
 0x1c3   : > { %1853 = vmatprep.subr.bf16.mxu1 %v2242_v11 }
 0x28c   : > { %v543_v25 = vpop.f32.mrb[4].mxu1 }
 0x28d   : > { %v1827_v26 = vpop.f32.mrb[5].mxu1  ;;  %v592_v30 = vmul.f32 %v543_v25, %v543_v25 }
 0x28e   : > { %v546_v27 = vpop.f32.mrb[6].mxu1 }
 0x28f   : > { %v1828_v28 = vpop.f32.mrb[7].mxu1 }
 0x294   : > { %v586_v29 = vpop.f32.mrb[8].mxu1 }
 0x295   : > { %v593_v31 = vmul.f32 %v586_v29, %v586_v29  ;;  %v1833_v32 = vpop.f32.mrb[9].mxu1 }
 0x296   : > { %v589_v33 = vpop.f32.mrb[10].mxu1 }
 0x297   : > { %v594_v34 = vadd.f32 %v593_v31, %v592_v30  ;;  %v1834_v35 = vpop.f32.mrb[11].mxu1 }
 0x299   : > { %2043 = vrsqrt.f32 %v594_v34  ;;  %vm597_vm4 = vcmp.eq.f32.partialorder %v594_v34, inf  ;;  %v600_v38 = vand.u32 2147483648, %v594_v34  ;;  %vm599_vm6 = vcmp.eq.f32.partialorder %v594_v34, 0.0 }
 0x2a3   : > { %v2044_v36 = vpop.eup %2043 }
 0x2a4   : > { %v596_v37 = vmul.f32 %v2044_v36, %v594_v34 }
 0x2a6   : > { %v598_v39 = vsel %vm597_vm4, %v594_v34, %v596_v37 }
 0x2a7   : > { %v601_v40 = vsel %vm599_vm6, %v600_v38, %v598_v39 }
 0x2a8   : > { %v603_v41 = vsel %vm602_vm5, %v601_v40, -inf }
 0x2a9   : > { %604 = vmax.xlane.f32.xlu0 %v603_v41 }
 0x2bf   : > { %788 = vrot.lane.b32.xlu0 %v2497_v15, %s2245_s19 }
 0x2c3   : > { %847 = vrot.lane.b32.xlu0 %v2495_v13, %s2246_s18 }
 0x336   : > { %v605_v42 = vpop.xlane.xlu0 %604 }
 0x337   : > { %v606_v43 = vsub.f32 %v601_v40, %v605_v42 }
 0x339   : > { %v607_v44 = vmul.f32 1.442695, %v606_v43 }
 0x33a   : > { %v789_v49 = vpop.permute.xlu0 %788 }
 0x33b   : > { %2045 = vpow2.f32 %v607_v44  ;;  %v794_v51 = vsel %vm622_vm2, %v789_v49, 0 }
 0x33e   : > { %v848_v56 = vpop.permute.xlu0 %847 }
 0x33f   : > { %v853_v57 = vsel %vm502_vm3, %v848_v56, 0 }
 0x345   : > { %v2046_v45 = vpop.eup %2045 }
 0x346   : > { %v609_v46 = vsel %vm602_vm5, %v2046_v45, 0.0 }
 0x347   : > { %610 = vadd.xlane.f32.xlu1 %v609_v46 }
 0x358   : > { %719 = vrot.lane.b32.xlu1 %v2497_v15, %s2247_s23 }
 0x35c   : > { %669 = vrot.lane.b32.xlu1 %v2495_v13, %s2247_s23  ;;  %s1570_s23 = scalar_lea.sflag [#allocation10], %s2446_s29 }
 0x3d4   : > { %v611_v47 = vpop.xlane.xlu1 %610 }
 0x3d5   : > { %2047 = vrcp.f32 %v611_v47 }
 0x3d8   : > { %v720_v48 = vpop.permute.xlu1 %719 }
 0x3d9   : > { %v722_v55 = vsel %vm502_vm3, %v720_v48, 0 }
 0x3dc   : > { %v670_v50 = vpop.permute.xlu1 %669 }
 0x3dd   : > { %1844 = vmatmul.mubr.msk.bf16.vlgmr.msra.gmra.mrb[12].mxu1 %vm502_vm3, %v670_v50 }
 0x3de   : > { %1854 = vmatpush3.bf16.msra.mxu1 %v794_v51  ;;  %1855 = vmatprep.mubr.msk.bf16.mxu1 %vm2243_vm1, %v2242_v11 }
 0x3df   : > { %v2048_v52 = vpop.eup %2047  ;;  %1865 = vmatprep.subr.bf16.mxu1 %v2242_v11 }
 0x3e0   : > { %v613_v53 = vmul.f32 %v2048_v52, %v2046_v45 }
 0x3e2   : > { %614 = vst.msk [vmem:[%s2534_s20] sm:$0xff] %vm602_vm5, %v613_v53  ;;  %v615_v54 = vpack.c.bf16 %v613_v53, %v613_v53 }
 0x3e4   : > { %1838 = vmatmul.mubr.msk.bf16.vlgmr.msra.gmra.mrb[0].mxu0 %vm602_vm5, %v615_v54 }
 0x3e5   : > { %1848 = vmatpush3.bf16.xpose.msra.mxu0 %v722_v55  ;;  %1849 = vmatprep.mubr.msk.bf16.mxu0 %vm2243_vm1, %v2242_v11 }
 0x3e6   : > { %1859 = vmatprep.subr.bf16.mxu0 %v2242_v11 }
 0x3ec   : > { %1850 = vmatmul.mubr.msk.bf16.vlgmr.msra.gmra.mrb[4].mxu0 %vm502_vm3, %v670_v50 }
 0x3ed   : > { %1860 = vmatpush3.bf16.xpose.msra.mxu0 %v853_v57  ;;  %1861 = vmatprep.mubr.msk.bf16.mxu0 %vm2243_vm1, %v2242_v11 }
 0x3ee   : > { %1871 = vmatprep.subr.bf16.mxu0 %v2242_v11 }
 0x4b0   : > { %v713_v58 = vpop.f32.mrb[12].mxu1 }
 0x4b1   : > { %v1845_v59 = vpop.f32.mrb[13].mxu1  ;;  %v764_v4 = vmul.f32 %v713_v58, %v713_v58 }
 0x4b2   : > { %v716_v60 = vpop.f32.mrb[14].mxu1 }
 0x4b3   : > { %v1846_v61 = vpop.f32.mrb[15].mxu1 }
 0x4b7   : > { %v660_v62 = vpop.f32.mrb[0].mxu0 }
 0x4b8   : > { %v666_v63 = vpack.c.bf16 %v660_v62, %v660_v62  ;;  %v1839_v0 = vpop.f32.mrb[1].mxu0 }
 0x4b9   : > { %v663_v1 = vpop.f32.mrb[2].mxu0 }
 0x4ba   : > { %668 = vst.msk [vmem:[#allocation2] sm:$0xf] %vm667_vm7, %v666_v63  ;;  %v1840_v2 = vpop.f32.mrb[3].mxu0 }
 0x4bf   : > { %v758_v3 = vpop.f32.mrb[4].mxu0 }
 0x4c0   : > { %v765_v5 = vmul.f32 %v758_v3, %v758_v3  ;;  %v1851_v6 = vpop.f32.mrb[5].mxu0 }
 0x4c1   : > { %v761_v7 = vpop.f32.mrb[6].mxu0 }
 0x4c2   : > { %v766_v8 = vadd.f32 %v765_v5, %v764_v4  ;;  %v1852_v10 = vpop.f32.mrb[7].mxu0 }
 0x4c4   : > { %2049 = vrsqrt.f32 %v766_v8  ;;  %vm769_vm8 = vcmp.eq.f32.partialorder %v766_v8, inf  ;;  %v772_v16 = vand.u32 2147483648, %v766_v8  ;;  %vm771_vm9 = vcmp.eq.f32.partialorder %v766_v8, 0.0 }
 0x4ce   : > { %v2050_v12 = vpop.eup %2049 }
 0x4cf   : > { %v768_v14 = vmul.f32 %v2050_v12, %v766_v8 }
 0x4d1   : > { %v770_v17 = vsel %vm769_vm8, %v766_v8, %v768_v14 }
 0x4d2   : > { %v773_v18 = vsel %vm771_vm9, %v772_v16, %v770_v17 }
 0x4d3   : > { %v774_v19 = vsel %vm602_vm5, %v773_v18, -inf }
 0x4d4   : > { %775 = vmax.xlane.f32.xlu1 %v774_v19 }
 0x561   : > { %v776_v20 = vpop.xlane.xlu1 %775 }
 0x562   : > { %v777_v21 = vsub.f32 %v773_v18, %v776_v20 }
 0x564   : > { %v778_v22 = vmul.f32 1.442695, %v777_v21 }
 0x566   : > { %2051 = vpow2.f32 %v778_v22 }
 0x570   : > { %v2052_v23 = vpop.eup %2051 }
 0x571   : > { %v780_v24 = vsel %vm602_vm5, %v2052_v23, 0.0 }
 0x572   : > { %781 = vadd.xlane.f32.xlu0 %v780_v24 }
 0x588   : > { %895 = vrot.lane.b32.xlu0 %v2497_v15, %s2248_s22 }
 0x58c   : > { %845 = vrot.lane.b32.xlu0 %v2495_v13, %s2248_s22 }
 0x5ff   : > { %v782_v25 = vpop.xlane.xlu0 %781 }
 0x600   : > { %2053 = vrcp.f32 %v782_v25 }
 0x603   : > { %v896_v26 = vpop.permute.xlu0 %895 }
 0x604   : > { %v898_v31 = vsel %vm502_vm3, %v896_v26, 0 }
 0x607   : > { %v846_v27 = vpop.permute.xlu0 %845 }
 0x608   : > { %1862 = vmatmul.mubr.msk.bf16.vlgmr.msra.gmra.mrb[8].mxu0 %vm502_vm3, %v846_v27 }
 0x609   : > { %1873 = vmatprep.mubr.msk.bf16.mxu0 %vm2243_vm1, %v2242_v11 }
 0x60a   : > { %v2054_v28 = vpop.eup %2053 }
 0x60b   : > { %v784_v29 = vmul.f32 %v2054_v28, %v2052_v23 }
 0x60d   : > { %1736 = vst.msk [vmem:[%s2534_s20 + $0x8] sm:$0xff] %vm602_vm5, %v784_v29  ;;  %v787_v30 = vpack.c.bf16 %v784_v29, %v784_v29 }
 0x60f   : > { %1856 = vmatmul.mubr.msk.bf16.vlgmr.msra.gmra.mrb[16].mxu1 %vm602_vm5, %v787_v30 }
 0x610   : > { %1866 = vmatpush3.bf16.xpose.msra.mxu1 %v898_v31  ;;  %1867 = vmatprep.mubr.msk.bf16.mxu1 %vm2243_vm1, %v2242_v11 }
 0x611   : > { %1877 = vmatprep.subr.bf16.mxu1 %v2242_v11 }
 0x617   : > { %1868 = vmatmul.mubr.msk.bf16.vlgmr.msra.gmra.mrb[20].mxu1 %vm502_vm3, %v846_v27 }
 0x618   : > { %1879 = vmatprep.mubr.msk.bf16.mxu1 %vm2243_vm1, %v2242_v11 }
 0x6db   : > { %v889_v32 = vpop.f32.mrb[8].mxu0 }
 0x6dc   : > { %v1863_v33 = vpop.f32.mrb[9].mxu0  ;;  %v940_v41 = vmul.f32 %v889_v32, %v889_v32 }
 0x6dd   : > { %v892_v34 = vpop.f32.mrb[10].mxu0 }
 0x6de   : > { %v1864_v35 = vpop.f32.mrb[11].mxu0 }
 0x6e2   : > { %v2567_v36 = vpop.f32.mrb[16].mxu1 }
 0x6e3   : > { %v1857_v37 = vpop.f32.mrb[17].mxu1  ;;  %v1776_v34 = vpack.c.bf16 %v2567_v36, %v2567_v36 }
 0x6e4   : > { %v833_v38 = vpop.f32.mrb[18].mxu1 }
 0x6e5   : > { %v1858_v39 = vpop.f32.mrb[19].mxu1 }
 0x6ea   : > { %v934_v40 = vpop.f32.mrb[20].mxu1 }
 0x6eb   : > { %v941_v42 = vmul.f32 %v934_v40, %v934_v40  ;;  %v1869_v43 = vpop.f32.mrb[21].mxu1 }
 0x6ec   : > { %v937_v44 = vpop.f32.mrb[22].mxu1  ;;  %v2027_v43 = vld [vmem:[%s2789_s2] sm:$0xff]  }
 0x6ed   : > { %v942_v45 = vadd.f32 %v941_v42, %v940_v41  ;;  %v1870_v46 = vpop.f32.mrb[23].mxu1  ;;  %v2028_v44 = vld [vmem:[%s2789_s2 + $0x8] sm:$0xff]  }
 0x6ee   : > { %v2030_v46 = vld [vmem:[%s2789_s2 + $0x18] sm:$0xff]  }
 0x6ef   : > { %2055 = vrsqrt.f32 %v942_v45  ;;  %vm945_vm10 = vcmp.eq.f32.partialorder %v942_v45, inf  ;;  %v948_v49 = vand.u32 2147483648, %v942_v45  ;;  %vm947_vm11 = vcmp.eq.f32.partialorder %v942_v45, 0.0 }
 0x6f9   : > { %v2056_v47 = vpop.eup %2055 }
 0x6fa   : > { %v944_v48 = vmul.f32 %v2056_v47, %v942_v45 }
 0x6fc   : > { %v946_v50 = vsel %vm945_vm10, %v942_v45, %v944_v48  ;;  %v2029_v45 = vld [vmem:[%s2789_s2 + $0x10] sm:$0xff]  }
 0x6fd   : > { %v949_v51 = vsel %vm947_vm11, %v948_v49, %v946_v50 }
 0x6fe   : > { %v950_v52 = vsel %vm602_vm5, %v949_v51, -inf }
 0x6ff   : > { %951 = vmax.xlane.f32.xlu1 %v950_v52 }
 0x710   : > { %964 = vrot.lane.b32.xlu1 %v2497_v15, %s2246_s18 }
 0x714   : > { %1023 = vrot.lane.b32.xlu1 %v2495_v13, %s2249_s21 }
 0x718   : > { %1071 = vrot.lane.b32.xlu1 %v2497_v15, %s2250_s30 }
 0x71c   : > { %1021 = vrot.lane.b32.xlu1 %v2495_v13, %s2250_s30 }
 0x78c   : > { %v952_v53 = vpop.xlane.xlu1 %951 }
 0x78d   : > { %v953_v54 = vsub.f32 %v949_v51, %v952_v53 }
 0x78f   : > { %v954_v55 = vmul.f32 1.442695, %v953_v54 }
 0x790   : > { %v965_v56 = vpop.permute.xlu1 %964 }
 0x791   : > { %2057 = vpow2.f32 %v954_v55  ;;  %v970_v57 = vsel %vm622_vm2, %v965_v56, 0 }
 0x792   : > { %1872 = vmatpush3.bf16.msra.mxu0 %v970_v57 }
 0x793   : > { %1883 = vmatprep.subr.bf16.mxu0 %v2242_v11 }
 0x794   : > { %v1024_v58 = vpop.permute.xlu1 %1023 }
 0x795   : > { %v1029_v59 = vsel %vm502_vm3, %v1024_v58, 0 }
 0x796   : > { %1878 = vmatpush3.bf16.xpose.msra.mxu1 %v1029_v59 }
 0x797   : > { %1889 = vmatprep.subr.bf16.mxu1 %v2242_v11 }
 0x798   : > { %v1072_v60 = vpop.permute.xlu1 %1071 }
 0x799   : > { %v1074_v3 = vsel %vm502_vm3, %v1072_v60, 0 }
 0x79b   : > { %v2058_v61 = vpop.eup %2057 }
 0x79c   : > { %v1022_v13 = vpop.permute.xlu1 %1021  ;;  %v956_v62 = vsel %vm602_vm5, %v2058_v61, 0.0 }
 0x79d   : > { %957 = vadd.xlane.f32.xlu0 %v956_v62  ;;  %1880 = vmatmul.mubr.msk.bf16.vlgmr.msra.gmra.mrb[24].mxu1 %vm502_vm3, %v1022_v13 }
 0x79e   : > { %1891 = vmatprep.mubr.msk.bf16.mxu1 %vm2243_vm1, %v2242_v11 }
 0x82a   : > { %v958_v63 = vpop.xlane.xlu0 %957 }
 0x82b   : > { %2059 = vrcp.f32 %v958_v63 }
 0x835   : > { %v2060_v0 = vpop.eup %2059 }
 0x836   : > { %v960_v1 = vmul.f32 %v2060_v0, %v2058_v61 }
 0x838   : > { %1741 = vst.msk [vmem:[%s2534_s20 + $0x10] sm:$0xff] %vm602_vm5, %v960_v1  ;;  %v963_v2 = vpack.c.bf16 %v960_v1, %v960_v1 }
 0x83a   : > { %1874 = vmatmul.mubr.msk.bf16.vlgmr.msra.gmra.mrb[12].mxu0 %vm602_vm5, %v963_v2 }
 0x83b   : > { %1884 = vmatpush3.bf16.xpose.msra.mxu0 %v1074_v3  ;;  %1885 = vmatprep.mubr.msk.bf16.mxu0 %vm2243_vm1, %v2242_v11 }
 0x83c   : > { %1895 = vmatprep.subr.bf16.mxu0 %v2242_v11 }
 0x842   : > { %1886 = vmatmul.mubr.msk.bf16.vlgmr.msra.gmra.mrb[16].mxu0 %vm502_vm3, %v1022_v13  ;;  %vm1274_vm3 = vcmask 261120  }
 0x843   : > { %1903 = vmatprep.mubr.msk.bf16.mxu0 %vm2243_vm1, %v2242_v11  ;;  %1896 = vmatpush3.bf16.msra.mxu0 %v2027_v43 }
 0x844   : > { %1897 = vmatprep.subr.bf16.mxu0 %v2242_v11 }
 0x847   : > { %1898 = vmatpush3.bf16.msra.mxu0 %v2028_v44 }
 0x848   : > { %1899 = vmatprep.subr.bf16.mxu0 %v2242_v11 }
 0x84b   : > { %1900 = vmatpush3.bf16.msra.mxu0 %v2029_v45 }
 0x84c   : > { %1901 = vmatprep.subr.bf16.mxu0 %v2242_v11 }
 0x84f   : > { %1902 = vmatpush3.bf16.msra.mxu0 %v2030_v46 }
 0x850   : > { %1919 = vmatprep.subr.bf16.mxu0 %v2242_v11 }
 0x870   : > { %v1065_v4 = vpop.f32.mrb[24].mxu1 }
 0x871   : > { %v1881_v5 = vpop.f32.mrb[25].mxu1  ;;  %v1116_v17 = vmul.f32 %v1065_v4, %v1065_v4 }
 0x872   : > { %v1068_v6 = vpop.f32.mrb[26].mxu1 }
 0x873   : > { %v1882_v7 = vpop.f32.mrb[27].mxu1 }
 0x874   : > { %v2031_v7 = vld [vmem:[#allocation6] sm:$0xff]  }
 0x90d   : > { %v1006_v8 = vpop.f32.mrb[12].mxu0 }
 0x90e   : > { %v1875_v10 = vpop.f32.mrb[13].mxu0  ;;  %v1777_v35 = vpack.c.bf16 %v1006_v8, %v1006_v8  ;;  %v2032_v8 = vld [vmem:[#allocation6 + $0x8] sm:$0xff]  }
 0x90f   : > { %v1009_v12 = vpop.f32.mrb[14].mxu0  ;;  %v2033_v10 = vld [vmem:[#allocation6 + $0x10] sm:$0xff]  }
 0x910   : > { %v1876_v14 = vpop.f32.mrb[15].mxu0  ;;  %v2034_v12 = vld [vmem:[#allocation6 + $0x18] sm:$0xff]  }
 0x911   : > { %v2035_v14 = vld [vmem:[%s2792_s5] sm:$0xff]  }
 0x915   : > { %v1110_v16 = vpop.f32.mrb[16].mxu0 }
 0x916   : > { %v1117_v18 = vmul.f32 %v1110_v16, %v1110_v16  ;;  %v1887_v19 = vpop.f32.mrb[17].mxu0  ;;  %v2036_v16 = vld [vmem:[%s2792_s5 + $0x8] sm:$0xff]  }
 0x917   : > { %v1113_v20 = vpop.f32.mrb[18].mxu0  ;;  %v2039_v19 = vld [vmem:[%s2792_s5 + $0x20] sm:$0xff]  }
 0x918   : > { %v1118_v21 = vadd.f32 %v1117_v18, %v1116_v17  ;;  %v1888_v22 = vpop.f32.mrb[19].mxu0  ;;  %v2037_v17 = vld [vmem:[%s2792_s5 + $0x10] sm:$0xff]   ;;  %v2038_v18 = vld [vmem:[%s2792_s5 + $0x18] sm:$0xff]   ;;  %v2040_v20 = vld [vmem:[%s2792_s5 + $0x28] sm:$0xff]  }
 0x91a   : > { %2061 = vrsqrt.f32 %v1118_v21  ;;  %vm1121_vm12 = vcmp.eq.f32.partialorder %v1118_v21, inf  ;;  %v1124_v25 = vand.u32 2147483648, %v1118_v21  ;;  %vm1123_vm13 = vcmp.eq.f32.partialorder %v1118_v21, 0.0 }
 0x924   : > { %v2062_v23 = vpop.eup %2061 }
 0x925   : > { %v1120_v24 = vmul.f32 %v2062_v23, %v1118_v21 }
 0x927   : > { %v1122_v26 = vsel %vm1121_vm12, %v1118_v21, %v1120_v24  ;;  %v2041_v21 = vld [vmem:[%s2792_s5 + $0x30] sm:$0xff]  }
 0x928   : > { %v1125_v27 = vsel %vm1123_vm13, %v1124_v25, %v1122_v26 }
 0x929   : > { %v1126_v28 = vsel %vm602_vm5, %v1125_v27, -inf }
 0x92a   : > { %1127 = vmax.xlane.f32.xlu1 %v1126_v28  ;;  %v1311_v28 = vlaneseq }
 0x9b7   : > { %v1128_v29 = vpop.xlane.xlu1 %1127 }
 0x9b8   : > { %v1129_v30 = vsub.f32 %v1125_v27, %v1128_v29  ;;  %v2667_v29 = vshrl.u32 %v1311_v28, 7 }
 0x9ba   : > { %v1130_v31 = vmul.f32 1.442695, %v1129_v30  ;;  %v1313_v30 = vsub.s32 0, %v2667_v29 }
 0x9bc   : > { %2063 = vpow2.f32 %v1130_v31  ;;  %v1206_v31 = vld [vmem:[%s2794_s7] sm:$0x3] }
 0x9c6   : > { %v2064_v32 = vpop.eup %2063 }
 0x9c7   : > { %v1132_v33 = vsel %vm602_vm5, %v2064_v32, 0.0 }
 0x9c8   : > { %1133 = vadd.xlane.f32.xlu0 %v1132_v33 }
 0x9de   : > { %1140 = vrot.lane.b32.xlu0 %v2497_v15, %s2249_s21 }
 0x9e2   : > { %840 = vrot.lane.b32.xlu0 %v1776_v34, %s2249_s21  ;;  %v1314_v34 = vrot.slane %v1206_v31, %v1313_v30 }
 0x9e6   : > { %1016 = vrot.lane.b32.xlu0 %v1777_v35, %s2246_s18  ;;  %s2700_s18 = scalar_lea.hbm %s2797_s10, %s1779_s26 }
 0xa55   : > { %v1134_v37 = vpop.xlane.xlu0 %1133 }
 0xa56   : > { %2065 = vrcp.f32 %v1134_v37 }
 0xa59   : > { %v1141_v38 = vpop.permute.xlu0 %1140 }
 0xa5a   : > { %v1146_v39 = vsel %vm622_vm2, %v1141_v38, 0  ;;  %vm1195_vm2 = vcmask 519552  }
 0xa5b   : > { %1890 = vmatpush3.bf16.msra.mxu1 %v1146_v39 }
 0xa5c   : > { %1907 = vmatprep.subr.bf16.mxu1 %v2242_v11 }
 0xa5d   : > { %v841_v40 = vpop.permute.xlu0 %840 }
 0xa5e   : > { %844 = vst.msk [vmem:[#allocation2] sm:$0xf] %vm843_vm14, %v841_v40 }
 0xa60   : > { %v2066_v15 = vpop.eup %2065 }
 0xa61   : > { %v1136_v36 = vmul.f32 %v2066_v15, %v2064_v32  ;;  %v1017_v41 = vpop.permute.xlu0 %1016 }
 0xa62   : > { %1020 = vst.msk [vmem:[#allocation2] sm:$0xf] %vm1019_vm15, %v1017_v41  ;;  %v2042_v41 = vld [vmem:[%s2792_s5 + $0x38] sm:$0xff]  }
 0xa63   : > { %1746 = vst.msk [vmem:[%s2534_s20 + $0x18] sm:$0xff] %vm602_vm5, %v1136_v36  ;;  %v1139_v42 = vpack.c.bf16 %v1136_v36, %v1136_v36 }
 0xa65   : > { %1892 = vmatmul.mubr.msk.bf16.vlgmr.msra.gmra.mrb[28].mxu1 %vm602_vm5, %v1139_v42  ;;  %v1754_v42 = vld [vmem:[%s2791_s4] ss:$0 sm:$0xff] }
 0xa66   : > { %1915 = vmatprep.mubr.msk.bf16.mxu1 %vm2243_vm1, %v2242_v11  ;;  %1908 = vmatpush3.bf16.msra.mxu1 %v2031_v7 }
 0xa67   : > { %1909 = vmatprep.subr.bf16.mxu1 %v2242_v11 }
 0xa6a   : > { %1910 = vmatpush3.bf16.msra.mxu1 %v2032_v8 }
 0xa6b   : > { %1911 = vmatprep.subr.bf16.mxu1 %v2242_v11 }
 0xa6e   : > { %1912 = vmatpush3.bf16.msra.mxu1 %v2033_v10 }
 0xa6f   : > { %1913 = vmatprep.subr.bf16.mxu1 %v2242_v11 }
 0xa72   : > { %1914 = vmatpush3.bf16.msra.mxu1 %v2034_v12 }
 0xb38   : > { %v1182_v47 = vpop.f32.mrb[28].mxu1 }
 0xb39   : > { %v1778_v48 = vpack.c.bf16 %v1182_v47, %v1182_v47  ;;  %v1893_v49 = vpop.f32.mrb[29].mxu1 }
 0xb3a   : > { %v1185_v50 = vpop.f32.mrb[30].mxu1  ;;  %v1760_v49 = vld [vmem:[%s2793_s6] ss:$0 sm:$0xff] }
 0xb3b   : > { %1192 = vrot.lane.b32.xlu0 %v1778_v48, %s2245_s19  ;;  %v1894_v51 = vpop.f32.mrb[31].mxu1 }
 0xbad   : > { %v1193_v52 = vpop.permute.xlu0 %1192 }
 0xbae   : > { %1196 = vst.msk [vmem:[#allocation2] sm:$0xf] %vm1195_vm2, %v1193_v52 }
 0xbb5   : > { %v1197_v53 = vld [vmem:[#allocation2] sm:$0xf] }
 0xbb6   : > { %1904 = vmatmul.mubr.msk.bf16.vlgmr.msra.gmra.mrb[20].mxu0 %vm452_vm0, %v1197_v53 }
 0xbb7   : > { %1935 = vmatprep.mubr.msk.bf16.mxu0 %vm2243_vm1, %v2242_v11  ;;  %1920 = vmatpush3.bf16.msra.mxu0 %v2035_v14 }
 0xbb8   : > { %1921 = vmatprep.subr.bf16.mxu0 %v2242_v11 }
 0xbbb   : > { %1922 = vmatpush3.bf16.msra.mxu0 %v2036_v16 }
 0xbbc   : > { %1923 = vmatprep.subr.bf16.mxu0 %v2242_v11 }
 0xbbf   : > { %1924 = vmatpush3.bf16.msra.mxu0 %v2037_v17 }
 0xbc0   : > { %1925 = vmatprep.subr.bf16.mxu0 %v2242_v11 }
 0xbc3   : > { %1926 = vmatpush3.bf16.msra.mxu0 %v2038_v18 }
 0xbc4   : > { %1927 = vmatprep.subr.bf16.mxu0 %v2242_v11 }
 0xbc7   : > { %1928 = vmatpush3.bf16.msra.mxu0 %v2039_v19 }
 0xbc8   : > { %1929 = vmatprep.subr.bf16.mxu0 %v2242_v11 }
 0xbcb   : > { %1930 = vmatpush3.bf16.msra.mxu0 %v2040_v20 }
 0xbcc   : > { %1931 = vmatprep.subr.bf16.mxu0 %v2242_v11 }
 0xbcf   : > { %1932 = vmatpush3.bf16.msra.mxu0 %v2041_v21 }
 0xbd0   : > { %1933 = vmatprep.subr.bf16.mxu0 %v2242_v11  ;;  %v1318_v11 = vsub.s32 1, %v2667_v29 }
 0xbd2   : > { %v1319_v38 = vrot.slane %v1206_v31, %v1318_v11 }
 0xbd3   : > { %1934 = vmatpush3.bf16.msra.mxu0 %v2042_v41 }
 0xc89   : > { %v1268_v54 = vpop.f32.mrb[20].mxu0 }
 0xc8a   : > { %v1269_v55 = vadd.f32 %v1268_v54, %v2484_v9  ;;  %v1905_v56 = vpop.f32.mrb[21].mxu0 }
 0xc8b   : > { %v1271_v57 = vpop.f32.mrb[22].mxu0 }
 0xc8c   : > { %1290 = vrot.lane.b32.xlu1 %v1269_v55, %s2248_s22  ;;  %v1906_v58 = vpop.f32.mrb[23].mxu0  ;;  %v1275_v59 = vsel %vm1274_vm3, %v1269_v55, 0.0 }
 0xcb0   : > { %1276 = vadd.xlane.f32.xlu1 %v1275_v59 }
 0xcfe   : > { %v1291_v60 = vpop.permute.xlu1 %1290 }
 0xcff   : > { %v1293_v61 = vsel %vm1274_vm3, %v1291_v60, 0.0 }
 0xd00   : > { %1294 = vadd.xlane.f32.xlu0 %v1293_v61 }
 0xd3d   : > { %v1277_v13 = vpop.xlane.xlu1 %1276 }
 0xd3e   : > { %v1279_v62 = vmul.f32 0.03125, %v1277_v13 }
 0xd40   : > { %v1280_v63 = vsub.f32 %v1269_v55, %v1279_v62 }
 0xd42   : > { %v1281_v0 = vmul.f32 %v1280_v63, %v1280_v63 }
 0xd44   : > { %v1282_v1 = vsel %vm1274_vm3, %v1281_v0, 0.0 }
 0xd45   : > { %1283 = vadd.xlane.f32.xlu1 %v1282_v1 }
 0xd8d   : > { %v1295_v9 = vpop.xlane.xlu0 %1294 }
 0xd8e   : > { %v1296_v2 = vmul.f32 0.03125, %v1295_v9 }
 0xd90   : > { %v1297_v3 = vsub.f32 %v1269_v55, %v1296_v2 }
 0xd92   : > { %v1298_v4 = vmul.f32 %v1297_v3, %v1297_v3 }
 0xd94   : > { %1300 = vrot.lane.b32.xlu0 %v1298_v4, %s2248_s22 }
 0xdd2   : > { %v1284_v22 = vpop.xlane.xlu1 %1283 }
 0xdd3   : > { %v1285_v23 = vmul.f32 0.03125, %v1284_v22 }
 0xdd5   : > { %v1286_v24 = vadd.f32 1e-06, %v1285_v23 }
 0xdd7   : > { %2067 = vrsqrt.f32 %v1286_v24 }
 0xde1   : > { %v2068_v32 = vpop.eup %2067 }
 0xde2   : > { %v1288_v35 = vmul.f32 %v2068_v32, %v1280_v63 }
 0xe06   : > { %v1301_v5 = vpop.permute.xlu0 %1300 }
 0xe07   : > { %v1303_v6 = vsel %vm1274_vm3, %v1301_v5, 0.0 }
 0xe08   : > { %1304 = vadd.xlane.f32.xlu0 %v1303_v6 }
 0xe95   : > { %v1305_v25 = vpop.xlane.xlu0 %1304 }
 0xe96   : > { %v1306_v26 = vmul.f32 0.03125, %v1305_v25 }
 0xe98   : > { %v1307_v27 = vadd.f32 1e-06, %v1306_v26 }
 0xe9a   : > { %2069 = vrsqrt.f32 %v1307_v27 }
 0xea4   : > { %v2070_v33 = vpop.eup %2069 }
 0xea5   : > { %v1309_v37 = vmul.f32 %v2070_v33, %v1297_v3 }
 0xea7   : > { %v1310_v39 = vsel %vm1274_vm3, %v1288_v35, %v1309_v37 }
 0xea8   : > { %v1315_v40 = vmul.f32 %v1314_v34, %v1310_v39 }
 0xeaa   : > { %v1320_v15 = vadd.f32 %v1319_v38, %v1315_v40 }
 0xeac   : > { %v1321_v36 = vpack.c.bf16 %v1320_v15, %v1320_v15 }
 0xeae   : > { %1916 = vmatmul.mubr.msk.bf16.vlgmr.msra.gmra.mrb[32].mxu1 %vm452_vm0, %v1321_v36 }
 0xf81   : > { %v1398_v43 = vpop.f32.mrb[32].mxu1 }
 0xf82   : > { %v1399_v44 = vadd.f32 %v1754_v42, %v1398_v43  ;;  %v1917_v45 = vpop.f32.mrb[33].mxu1 }
 0xf83   : > { %v1401_v46 = vpop.f32.mrb[34].mxu1 }
 0xf84   : > { %v1404_v47 = vpack.c.bf16 %v1399_v44, %v1399_v44  ;;  %v1918_v48 = vpop.f32.mrb[35].mxu1 }
 0xf86   : > { %1936 = vmatmul.mubr.bf16.vlgmr.msra.gmra.mrb[24].mxu0 %v1404_v47 }
0x1059   : > { %v1510_v50 = vpop.f32.mrb[24].mxu0 }
0x105a   : > { %v1511_v51 = vadd.f32 %v1760_v49, %v1510_v50  ;;  %v1937_v52 = vpop.f32.mrb[25].mxu0 }
0x105b   : > { %v1513_v53 = vpop.f32.mrb[26].mxu0 }
0x105c   : > { %v1517_v54 = vadd.f32 %v1511_v51, %v1320_v15  ;;  %v1938_v55 = vpop.f32.mrb[27].mxu0 }
0x105e   : > { %1532 = vrot.lane.b32.xlu1 %v1517_v54, %s2248_s22  ;;  %v1518_v56 = vsel %vm1274_vm3, %v1517_v54, 0.0 }
0x105f   : > { %1519 = vadd.xlane.f32.xlu0 %v1518_v56 }
0x10d0   : > { %v1533_v57 = vpop.permute.xlu1 %1532 }
0x10d1   : > { %v1535_v58 = vsel %vm1274_vm3, %v1533_v57, 0.0 }
0x10d2   : > { %1536 = vadd.xlane.f32.xlu1 %v1535_v58 }
0x10ec   : > { %v1520_v59 = vpop.xlane.xlu0 %1519 }
0x10ed   : > { %v1521_v60 = vmul.f32 0.03125, %v1520_v59 }
0x10ef   : > { %v1522_v61 = vsub.f32 %v1517_v54, %v1521_v60 }
0x10f1   : > { %v1523_v13 = vmul.f32 %v1522_v61, %v1522_v61 }
0x10f3   : > { %v1524_v62 = vsel %vm1274_vm3, %v1523_v13, 0.0 }
0x10f4   : > { %1525 = vadd.xlane.f32.xlu1 %v1524_v62 }
0x115f   : > { %v1537_v63 = vpop.xlane.xlu1 %1536 }
0x1160   : > { %v1538_v0 = vmul.f32 0.03125, %v1537_v63 }
0x1162   : > { %v1539_v1 = vsub.f32 %v1517_v54, %v1538_v0 }
0x1164   : > { %v1540_v9 = vmul.f32 %v1539_v1, %v1539_v1 }
0x1166   : > { %1542 = vrot.lane.b32.xlu0 %v1540_v9, %s2248_s22  ;;  %s2251_s22 = smov [#allocation9]  }
0x1167   : > { %s2137_s21 = sshll.u32 %s2251_s22, 4  ;;  %s2138_s21 = int_to_ptr.vmem [resolvable:$false] %s2137_s21 }
0x1168   : > { %s2139_s20 = scalar_lea.vmem %s2138_s21, 1024  ;;  %p2140_p10 = scmp.lt.s32.totalorder %s2702_s27, %s2138_s21 }
0x1169   : > { %p2141_p13 = scmp.lt.s32.totalorder %s2139_s20, %s2133_s13 }
0x116b   : > { %p2142_p3 = por %p2141_p13, %p2140_p10 }
0x116d   : > { %p2143_p7 = pnand %p2142_p3, %p2136_p8 }
0x11d8   : > { %v1543_v2 = vpop.permute.xlu0 %1542 }
0x11d9   : > { %v1545_v3 = vsel %vm1274_vm3, %v1543_v2, 0.0 }
0x11da   : > { %1546 = vadd.xlane.f32.xlu0 %v1545_v3 }
0x11db   : > { %2146 = shalt.err (!%p2143_p7)
}
0x11dc   : > { %s2147_s19 = scalar_lea.hbm %s2700_s18, 512  ;;  %s2151_s28 = scalar_lea.hbm %s2797_s10, 1024 }
0x11dd   : > { %p2148_p9 = scmp.ne.s32.totalorder %s2700_s18, %s2147_s19  ;;  %p2152_p0 = scmp.lt.u32.totalorder %s2700_s18, %s2797_s10 }
0x11de   : > { %p2153_p11 = scmp.lt.u32.totalorder %s2151_s28, %s2147_s19  ;;  %p2155_p4 = scmp.lt.u32.totalorder %s2147_s19, %s2700_s18 }
0x11df   : > { %p2149_p2 = pnand %p2148_p9, %p2401_p12 }
0x11e0   : > { %p2154_p1 = por %p2153_p11, %p2152_p0 }
0x11e1   : > { %p2150_p5 = pneg %p2149_p2 }
0x11e2   : > { %p2156_p6 = por %p2155_p4, %p2154_p1 }
0x11e4   : > { %p2157_p8 = pnand %p2156_p6, %p2150_p5 }
0x11e6   : > { %2160 = shalt.err (!%p2157_p8)
}
0x11e7   : > { %s2252_s13 = smov 128   ;;  %s2253_s21 = smov 8   ;;  %v1526_v4 = vpop.xlane.xlu1 %1525  ;;  %v1516_v12 = vld [vmem:[%s2795_s8] sm:$0x3] }
0x11e8   : > { %1946 = dma.vmem_to_hbm [thread:$0]  (%p2401_p12), %s2702_s27, 512, %s2700_s18, %s1570_s23, %s2252_s13, %s2252_s13, %s2253_s21   ;;  %v1527_v5 = vmul.f32 0.03125, %v1526_v4  ;;  %v1556_v17 = vrot.slane %v1516_v12, %v1313_v30  ;;  %v1561_v20 = vrot.slane %v1516_v12, %v1318_v11 }
0x11e9   : > { %s1771_s27 = sshll.u32 %s2331_s17, 7  ;;  %s393_s18 = scalar_lea.vmem [#allocation8], %s1718_s11 }
0x11ea   : > { %v1528_v6 = vadd.f32 1e-06, %v1527_v5  ;;  %s1583_s23 = sshll.u32 %s393_s18, 4  ;;  %s2742_s28 = scalar_lea.hbm %s2796_s9, %s1771_s27  ;;  %s2744_s23 = int_to_ptr.vmem [resolvable:$true] %s1583_s23 }
0x11eb   : > { %s1565_s24 = scalar_lea.sflag [#allocation5], %s2446_s29  ;;  %s2161_s22 = scalar_lea.vmem %s2744_s23, 128 }
0x11ec   : > { %2071 = vrsqrt.f32 %v1528_v6  ;;  %p2162_p10 = scmp.ne.s32.totalorder %s2744_s23, %s2161_s22  ;;  %s2254_s17 = smov [#allocation8]  }
0x11ed   : > { %s2165_s11 = sshll.u32 %s2254_s17, 4  ;;  %s2166_s11 = int_to_ptr.vmem [resolvable:$false] %s2165_s11 }
0x11ee   : > { %p2163_p13 = pnand %p2162_p10, %p2401_p12  ;;  %s2167_s13 = scalar_lea.vmem %s2166_s11, 256 }
0x11ef   : > { %p2168_p7 = scmp.lt.s32.totalorder %s2744_s23, %s2166_s11  ;;  %p2169_p9 = scmp.lt.s32.totalorder %s2167_s13, %s2161_s22 }
0x11f0   : > { %p2164_p3 = pneg %p2163_p13 }
0x11f1   : > { %p2170_p2 = por %p2169_p9, %p2168_p7 }
0x11f3   : > { %p2171_p5 = pnand %p2170_p2, %p2164_p3 }
0x11f6   : > { %v2072_v14 = vpop.eup %2071 }
0x11f7   : > { %v1530_v18 = vmul.f32 %v2072_v14, %v1522_v61 }
0x1267   : > { %v1547_v7 = vpop.xlane.xlu0 %1546 }
0x1268   : > { %v1548_v8 = vmul.f32 0.03125, %v1547_v7 }
0x126a   : > { %v1549_v10 = vadd.f32 1e-06, %v1548_v8 }
0x126c   : > { %2073 = vrsqrt.f32 %v1549_v10 }
0x1276   : > { %v2074_v16 = vpop.eup %2073 }
0x1277   : > { %v1551_v19 = vmul.f32 %v2074_v16, %v1539_v1 }
0x1279   : > { %v1552_v21 = vsel %vm1274_vm3, %v1530_v18, %v1551_v19 }
0x127a   : > { %v1557_v22 = vmul.f32 %v1556_v17, %v1552_v21 }
0x127c   : > { %v1562_v23 = vadd.f32 %v1561_v20, %v1557_v22 }
0x127e   : > { %1563 = vst.msk [vmem:[%s393_s18] sm:$0xff] %vm452_vm0, %v1562_v23 }
0x127f   : > { %2174 = shalt.err (!%p2171_p5)
}
0x1280   : > { %s2175_s29 = scalar_lea.hbm %s2742_s28, 128  ;;  %s2179_s19 = scalar_lea.hbm %s2796_s9, 256 }
0x1281   : > { %p2176_p0 = scmp.ne.s32.totalorder %s2742_s28, %s2175_s29  ;;  %p2180_p4 = scmp.lt.u32.totalorder %s2742_s28, %s2796_s9 }
0x1282   : > { %p2181_p6 = scmp.lt.u32.totalorder %s2179_s19, %s2175_s29  ;;  %p2183_p10 = scmp.lt.u32.totalorder %s2175_s29, %s2742_s28 }
0x1283   : > { %p2177_p11 = pnand %p2176_p0, %p2401_p12 }
0x1284   : > { %p2182_p8 = por %p2181_p6, %p2180_p4 }
0x1285   : > { %p2178_p1 = pneg %p2177_p11 }
0x1286   : > { %p2184_p13 = por %p2183_p10, %p2182_p8 }
0x1288   : > { %p2185_p3 = pnand %p2184_p13, %p2178_p1 }
0x128a   : > { %2188 = shalt.err (!%p2185_p3)
}
0x128b   : > { %1945 = dma.vmem_to_hbm [thread:$0]  (%p2401_p12), %s2744_s23, 128, %s2742_s28, %s1565_s24  }
0x128c PF: > { %s2819_s30 = sld [smem:[#allocation15_spill]]  ;;  %s2820_s26 = sld [smem:[#allocation16_spill]] }
0x128d   : > { %p2822_p9 = scmp.ge.s32.totalorder %s2235_s16, 2 }
0x1292   : > { %s1611_s22 = sand.u32 1, %s2819_s30   ;;  %p2821_p7 = scmp.ne.s32.totalorder %s2820_s26, 0 }
0x1293   : > { %s1612_s17 = scalar_lea.sflag [#allocation5], %s1611_s22 }
0x1294   : > { %p1958_p2 = pnand %p2822_p9, %p2821_p7 }
0x1296   : > { %2214 = dma.done.wait (!%p1958_p2), %s1612_s17, 128  }
0x1297   : > { %2216 = vsyncadd (!%p1958_p2), %s1612_s17, 4294967168  ;;  %s1621_s11 = scalar_lea.sflag [#allocation10], %s1611_s22 }
0x1298   : > { %2218 = dma.done.wait (!%p1958_p2), %s1621_s11, 512  }
0x1299   : > { %2220 = vsyncadd (!%p1958_p2), %s1621_s11, 4294966784  ;;  %s2823_s16 = sld [smem:[#allocation17_spill]]  ;;  %s2824_s13 = smov %s2227_s14 }
0x129a   : > { %s2825_s14 = smov %s2231_s15  ;;  %s2826_s15 = smov %s2397_s25 }
0x129f   : > { %p28_p12 = scmp.ge.s32.totalorder %s2823_s16, 4  }
0x12a1   :  { %30 = sbr.rel (!%p28_p12) target bundleno = 8 (0x8), region = 125 }
0x12a8   :  { %1626 = vsyncpa [#allocation4], 1 }
0x12a9   :  { %1628 = vsyncpa [#allocation4 + $0x1], 1 }
0x12aa   :  { %1629 = vsyncpa [#allocation7], 1 }
0x12ab   :  { %1630 = vsyncpa [#allocation5], 1 }
0x12ac   :  { %1632 = vsyncpa [#allocation5 + $0x1], 1 }
0x12ad   :  { %1633 = vsyncpa [#allocation10], 1 }
0x12ae   :  { %1635 = vsyncpa [#allocation10 + $0x1], 1 }

</bundles_post_ra>
